<compile_context>
chip_gen: v7x
topology: tpu7x:2x2x1
jax: 0.10.0
libtpu: 0.0.40
codegen_flags: <defaults>
</compile_context>

<pallas_src>
import jax
import jax.numpy as jnp
from jax.experimental import pallas as pl
from jax.experimental.pallas import tpu as pltpu

INPUT_SIZE = 8
HIDDEN = 64
NUM_GATES = 4              # i, f, g, o (PyTorch order)
G = NUM_GATES * HIDDEN     # 256
GF = 2 * G                 # 512: fused [layer1 | layer0] gate width
H2 = 2 * HIDDEN            # 128: packed [h2 | h1] state width


def rnn_kernel(x_ref, wxw_ref, bw_ref, b1w_ref, wf_ref, a_ref, ofs_ref,
               woutw_ref, bout_ref, out_ref):
    B = out_ref.shape[0]
    T = x_ref.shape[0] // B

    # Hoisted wide input projection (single GEMM, off the serial path).
    # Column layout, gate-major 128-lane blocks: [i1 i0 | f1 f0 | g1 g0 | o1 o0].
    # Layer-1 columns of wxw/bw are zero, so layer-1 lanes of xp_raw are 0.
    xp_raw = (jnp.dot(x_ref[...], wxw_ref[...],
                      preferred_element_type=jnp.float32) + bw_ref[...])
    xp_raw = xp_raw.reshape(T, B, GF)

    # Bulk-add the layer-1 bias once (hoisted; no per-step bias broadcast).
    xp = xp_raw + b1w_ref[...]

    a_vec = a_ref[...]      # (1, GF): 0.5 on i/f/o lanes, 1.0 on g lanes
    o_vec = ofs_ref[...]    # (1, GF): 0.5 on i/f/o lanes, 0.0 on g lanes

    def gate_update(preact, c):
        # Single EUP tanh over the whole fused block; sigmoid recovered by the
        # per-lane FMA (0.5 is pre-baked into the i/f/o weight/bias columns).
        t = jnp.tanh(preact)
        gates = a_vec * t + o_vec                 # (B, GF)
        i = gates[:, 0 * H2:1 * H2]               # all slices 128-lane aligned
        f = gates[:, 1 * H2:2 * H2]
        g = gates[:, 2 * H2:3 * H2]
        o = gates[:, 3 * H2:4 * H2]
        c_new = f * c + i * g                     # packed [c2 | c1]
        h_new = o * jnp.tanh(c_new)               # packed [h2 | h1]
        return h_new, c_new

    # Packed state: lanes 0:64 -> layer-1 (h2/c2), lanes 64:128 -> layer-0 (h1/c1).
    c = jnp.zeros((B, H2), jnp.float32)

    # Prologue (no matmul): h1(0)/c1(0) from xp_raw[0]; its layer-1 lanes are
    # exactly zero, which the update maps to exact zeros for h2/c2.
    h, c = gate_update(xp_raw[0], c)

    # Main loop: ONE fused matmul per step computes layer-1(t) gates AND
    # layer-0(t+1)'s recurrent term together.  Weight is streamed from VMEM
    # (ref indexed inside the loop) to avoid pinning 64 vregs of weights.
    for t in range(T):
        fused = jnp.dot(h, wf_ref[...], preferred_element_type=jnp.float32)
        h, c = gate_update(fused + xp[(t + 1) % T], c)
        # At t == T-1 the layer-0 half (lanes 64:128) is a discarded dummy
        # step (wraps to xp[0]); only the layer-1 half is used below.

    # Final Linear(64 -> 1): VPU multiply + lane reduction (wout padded with
    # zeros on the layer-0 lanes) instead of an N=1 MXU round trip.
    out_ref[...] = (jnp.sum(h * woutw_ref[...], axis=-1, keepdims=True)
                    + bout_ref[...])


def rnn_forward(x, params):
    """x: (B, T, INPUT_SIZE) batch_first, like the PyTorch module."""
    B, T, _ = x.shape
    wx0, wh0, b0, wx1, wh1, b1, wout, bout = params
    f32 = jnp.float32
    H = HIDDEN

    # sigmoid(z) = 0.5*tanh(z/2) + 0.5 -> pre-scale i/f/o columns by 0.5 so
    # the matmul + bias directly produce z/2; g columns keep scale 1 (tanh).
    gate_scale = jnp.concatenate(
        [jnp.full((1, H), 0.5), jnp.full((1, H), 0.5),
         jnp.full((1, H), 1.0), jnp.full((1, H), 0.5)], axis=1).astype(f32)
    wx0_s, wh0_s, b0_s = wx0 * gate_scale, wh0 * gate_scale, b0 * gate_scale
    wx1_s, wh1_s, b1_s = wx1 * gate_scale, wh1 * gate_scale, b1 * gate_scale

    def blk(w, k):
        return w[:, k * H:(k + 1) * H]

    # Fused recurrent weight (128, 512).  Rows 0:64 multiply the packed h2
    # lanes, rows 64:128 multiply the packed h1 lanes.  Columns are gate-major
    # 128-lane blocks [layer1 | layer0] so every in-loop slice is vreg-aligned.
    z_hh = jnp.zeros((H, H), f32)
    cols = []
    for k in range(NUM_GATES):
        cols.append(jnp.concatenate([blk(wh1_s, k), blk(wx1_s, k)], axis=0))  # layer-1 gate k
        cols.append(jnp.concatenate([z_hh, blk(wh0_s, k)], axis=0))           # layer-0 gate k
    w_fused = jnp.concatenate(cols, axis=1)                   # (128, 512)

    # Wide input projection weight/bias: layer-1 lanes are zero so the hoisted
    # GEMM leaves them 0 (free prologue); b1 lives in a separate (1,512) row
    # that is bulk-added once inside the kernel.
    z_in = jnp.zeros((INPUT_SIZE, H), f32)
    z_b = jnp.zeros((1, H), f32)
    wxw_cols, bw_cols, b1w_cols = [], [], []
    for k in range(NUM_GATES):
        wxw_cols += [z_in, blk(wx0_s, k)]
        bw_cols += [z_b, blk(b0_s, k)]
        b1w_cols += [blk(b1_s, k), z_b]
    wxw = jnp.concatenate(wxw_cols, axis=1)                   # (INPUT, 512)
    bw = jnp.concatenate(bw_cols, axis=1)                     # (1, 512)
    b1w = jnp.concatenate(b1w_cols, axis=1)                   # (1, 512)

    # Per-lane FMA constants for the single-tanh gate activation.
    def lane_const(v_ifo, v_g):
        return jnp.concatenate(
            [jnp.full((1, H2), v, f32) for v in (v_ifo, v_ifo, v_g, v_ifo)],
            axis=1)
    a_vec = lane_const(0.5, 1.0)                              # (1, 512)
    ofs_vec = lane_const(0.5, 0.0)                            # (1, 512)

    # Output head padded to the packed 128-lane state (zeros on h1 lanes).
    wout_wide = jnp.concatenate(
        [wout.reshape(1, H), jnp.zeros((1, H), f32)], axis=1)  # (1, 128)

    # Layout plumbing only: time-major, flattened to (T*B, INPUT).
    x_flat = jnp.transpose(x, (1, 0, 2)).reshape(T * B, INPUT_SIZE)

    full = lambda shape: pl.BlockSpec(shape, lambda i, s=shape: (0,) * len(s))

    # NOTE(v7x): grid=(1,) uses a single TensorCore.  At this batch size that
    # is optimal; for larger B add a leading batch-tile grid axis with
    # dimension_semantics=("parallel", "arbitrary") to use both TCs.
    return pl.pallas_call(
        rnn_kernel,
        out_shape=jax.ShapeDtypeStruct((B, 1), jnp.float32),
        grid=(1,),
        in_specs=[
            full((T * B, INPUT_SIZE)),   # x (time-major, flattened)
            full((INPUT_SIZE, GF)),      # wx0_wide (scaled, interleaved)
            full((1, GF)),               # b0_wide (layer-0 lanes only)
            full((1, GF)),               # b1_wide (layer-1 lanes only)
            full((H2, GF)),              # fused [w1 | [wh0;0]] (scaled)
            full((1, GF)),               # FMA scale  (0.5 / 1.0)
            full((1, GF)),               # FMA offset (0.5 / 0.0)
            full((1, H2)),               # wout padded to packed state
            full((1, 1)),                # bout
        ],
        out_specs=full((B, 1)),
        compiler_params=pltpu.CompilerParams(
            dimension_semantics=("arbitrary",)),
    )(x_flat, wxw, bw, b1w, w_fused, a_vec, ofs_vec, wout_wide, bout)


def init_params(key):
    """Deterministic init mimicking PyTorch's U(-1/sqrt(H), 1/sqrt(H))."""
    bound = 1.0 / jnp.sqrt(jnp.float32(HIDDEN))
    keys = jax.random.split(key, 8)
    u = lambda k, shape: jax.random.uniform(
        k, shape, jnp.float32, -bound, bound)
    wx0 = u(keys[0], (INPUT_SIZE, G))   # = W_ih_l0^T
    wh0 = u(keys[1], (HIDDEN, G))       # = W_hh_l0^T
    b0 = u(keys[2], (1, G))             # = b_ih_l0 + b_hh_l0 (combined)
    wx1 = u(keys[3], (HIDDEN, G))       # = W_ih_l1^T
    wh1 = u(keys[4], (HIDDEN, G))       # = W_hh_l1^T
    b1 = u(keys[5], (1, G))             # = b_ih_l1 + b_hh_l1 (combined)
    wout = u(keys[6], (HIDDEN, 1))      # = W_out^T
    bout = u(keys[7], (1, 1))
    return (wx0, wh0, b0, wx1, wh1, b1, wout, bout)


def _lstm_cell_ref(x_in, h, c, wx, wh, b):
    """Pure-JAX single LSTM step, un-fused, for the reference."""
    gates = x_in @ wx + h @ wh + b
    i = jax.nn.sigmoid(gates[:, 0 * HIDDEN:1 * HIDDEN])
    f = jax.nn.sigmoid(gates[:, 1 * HIDDEN:2 * HIDDEN])
    g = jnp.tanh(gates[:, 2 * HIDDEN:3 * HIDDEN])
    o = jax.nn.sigmoid(gates[:, 3 * HIDDEN:4 * HIDDEN])
    c_new = f * c + i * g
    h_new = o * jnp.tanh(c_new)
    return h_new, c_new


def rnn_reference(x, params):
    """Pure-JAX reference matching torch.nn.LSTM(2 layers) + Linear."""
    wx0, wh0, b0, wx1, wh1, b1, wout, bout = params
    B, T, _ = x.shape
    h1 = jnp.zeros((B, HIDDEN), jnp.float32)
    c1 = jnp.zeros((B, HIDDEN), jnp.float32)
    h2 = jnp.zeros((B, HIDDEN), jnp.float32)
    c2 = jnp.zeros((B, HIDDEN), jnp.float32)
    for t in range(T):
        h1, c1 = _lstm_cell_ref(x[:, t, :], h1, c1, wx0, wh0, b0)
        h2, c2 = _lstm_cell_ref(h1, h2, c2, wx1, wh1, b1)
    return h2 @ wout + bout


if __name__ == "__main__":
    key = jax.random.PRNGKey(0)
    k_x, k_p = jax.random.split(key)

    B, T = 2, 8
    x = jax.random.normal(k_x, (B, T, INPUT_SIZE), dtype=jnp.float32)
    params = init_params(k_p)

    out = jax.block_until_ready(rnn_forward(x, params))
    ref = rnn_reference(x, params)

    assert out.shape == (B, 1), out.shape
    # Slightly relaxed vs 1e-5: fused K=128 matmul + sigmoid-via-tanh reorder
    # f32 roundings, still a tight correctness bar for these magnitudes.
    assert jnp.allclose(out, ref, atol=1e-4, rtol=1e-4), (out, ref)
    print("KERNEL_OK")
</pallas_src>

<mosaic_0001>
module attributes {stable_mosaic.version = 11 : i64} {
  func.func @rnn_kernel(%arg0: i32, %arg1: memref<16x8xf32, #tpu.memory_space<vmem>>, %arg2: memref<8x512xf32, #tpu.memory_space<vmem>>, %arg3: memref<1x512xf32, #tpu.memory_space<vmem>>, %arg4: memref<1x512xf32, #tpu.memory_space<vmem>>, %arg5: memref<128x512xf32, #tpu.memory_space<vmem>>, %arg6: memref<1x512xf32, #tpu.memory_space<vmem>>, %arg7: memref<1x512xf32, #tpu.memory_space<vmem>>, %arg8: memref<1x128xf32, #tpu.memory_space<vmem>>, %arg9: memref<1x1xf32, #tpu.memory_space<vmem>>, %arg10: memref<2x1xf32, #tpu.memory_space<vmem>>) attributes {dimension_semantics = [#tpu.dimension_semantics<arbitrary>], iteration_bounds = array<i64: 1>, scalar_prefetch = 0 : i64, scratch_operands = 0 : i64, tpu.core_type = #tpu.core_type<tc>, window_params = [{pipeline_mode = #tpu.pipeline_mode<synchronous>, transform_indices = @transform_0, window_bounds = array<i64: 16, 8>}, {pipeline_mode = #tpu.pipeline_mode<synchronous>, transform_indices = @transform_1, window_bounds = array<i64: 8, 512>}, {pipeline_mode = #tpu.pipeline_mode<synchronous>, transform_indices = @transform_2, window_bounds = array<i64: 1, 512>}, {pipeline_mode = #tpu.pipeline_mode<synchronous>, transform_indices = @transform_3, window_bounds = array<i64: 1, 512>}, {pipeline_mode = #tpu.pipeline_mode<synchronous>, transform_indices = @transform_4, window_bounds = array<i64: 128, 512>}, {pipeline_mode = #tpu.pipeline_mode<synchronous>, transform_indices = @transform_5, window_bounds = array<i64: 1, 512>}, {pipeline_mode = #tpu.pipeline_mode<synchronous>, transform_indices = @transform_6, window_bounds = array<i64: 1, 512>}, {pipeline_mode = #tpu.pipeline_mode<synchronous>, transform_indices = @transform_7, window_bounds = array<i64: 1, 128>}, {pipeline_mode = #tpu.pipeline_mode<synchronous>, transform_indices = @transform_8, window_bounds = array<i64: 1, 1>}, {pipeline_mode = #tpu.pipeline_mode<synchronous>, transform_indices = @transform_9, window_bounds = array<i64: 2, 1>}]} {
    %c0 = arith.constant 0 : index
    %c0_0 = arith.constant 0 : index
    %0 = vector.load %arg1[%c0, %c0_0] : memref<16x8xf32, #tpu.memory_space<vmem>>, vector<16x8xf32>
    %c0_1 = arith.constant 0 : index
    %c0_2 = arith.constant 0 : index
    %1 = vector.load %arg2[%c0_1, %c0_2] : memref<8x512xf32, #tpu.memory_space<vmem>>, vector<8x512xf32>
    %cst = arith.constant dense<0.000000e+00> : vector<16x512xf32>
    %2 = tpu.matmul %0, %1, %cst {dimension_numbers = #tpu.dot_dimension_numbers<[1], [0], [0], [1], [0, 0, 1, 1], [], []>} : vector<16x8xf32>, vector<8x512xf32>, vector<16x512xf32> -> vector<16x512xf32>
    %c0_3 = arith.constant 0 : index
    %c0_4 = arith.constant 0 : index
    %3 = vector.load %arg3[%c0_3, %c0_4] : memref<1x512xf32, #tpu.memory_space<vmem>>, vector<1x512xf32>
    %4 = vector.broadcast %3 : vector<1x512xf32> to vector<16x512xf32>
    %5 = arith.addf %2, %4 : vector<16x512xf32>
    %6 = vector.shape_cast %5 : vector<16x512xf32> to vector<8x2x512xf32>
    %c0_5 = arith.constant 0 : index
    %c0_6 = arith.constant 0 : index
    %7 = vector.load %arg4[%c0_5, %c0_6] : memref<1x512xf32, #tpu.memory_space<vmem>>, vector<1x512xf32>
    %8 = vector.shape_cast %7 : vector<1x512xf32> to vector<1x1x512xf32>
    %9 = vector.broadcast %8 : vector<1x1x512xf32> to vector<8x2x512xf32>
    %10 = arith.addf %6, %9 : vector<8x2x512xf32>
    %c0_7 = arith.constant 0 : index
    %c0_8 = arith.constant 0 : index
    %11 = vector.load %arg6[%c0_7, %c0_8] : memref<1x512xf32, #tpu.memory_space<vmem>>, vector<1x512xf32>
    %c0_9 = arith.constant 0 : index
    %c0_10 = arith.constant 0 : index
    %12 = vector.load %arg7[%c0_9, %c0_10] : memref<1x512xf32, #tpu.memory_space<vmem>>, vector<1x512xf32>
    %cst_11 = arith.constant 0.000000e+00 : f32
    %13 = vector.broadcast %cst_11 : f32 to vector<2x128xf32>
    %14 = vector.extract_strided_slice %6 {offsets = [0, 0, 0], sizes = [1, 2, 512], strides = [1, 1, 1]} : vector<8x2x512xf32> to vector<1x2x512xf32>
    %15 = vector.shape_cast %14 : vector<1x2x512xf32> to vector<2x512xf32>
    %16 = math.tanh %15 : vector<2x512xf32>
    %17 = vector.broadcast %11 : vector<1x512xf32> to vector<2x512xf32>
    %18 = arith.mulf %17, %16 : vector<2x512xf32>
    %19 = vector.broadcast %12 : vector<1x512xf32> to vector<2x512xf32>
    %20 = arith.addf %18, %19 : vector<2x512xf32>
    %21 = vector.extract_strided_slice %20 {offsets = [0, 0], sizes = [2, 128], strides = [1, 1]} : vector<2x512xf32> to vector<2x128xf32>
    %22 = vector.extract_strided_slice %20 {offsets = [0, 128], sizes = [2, 128], strides = [1, 1]} : vector<2x512xf32> to vector<2x128xf32>
    %23 = vector.extract_strided_slice %20 {offsets = [0, 256], sizes = [2, 128], strides = [1, 1]} : vector<2x512xf32> to vector<2x128xf32>
    %24 = vector.extract_strided_slice %20 {offsets = [0, 384], sizes = [2, 128], strides = [1, 1]} : vector<2x512xf32> to vector<2x128xf32>
    %25 = arith.mulf %22, %13 : vector<2x128xf32>
    %26 = arith.mulf %21, %23 : vector<2x128xf32>
    %27 = arith.addf %25, %26 : vector<2x128xf32>
    %28 = math.tanh %27 : vector<2x128xf32>
    %29 = arith.mulf %24, %28 : vector<2x128xf32>
    %c0_12 = arith.constant 0 : index
    %c0_13 = arith.constant 0 : index
    %30 = vector.load %arg5[%c0_12, %c0_13] : memref<128x512xf32, #tpu.memory_space<vmem>>, vector<128x512xf32>
    %cst_14 = arith.constant dense<0.000000e+00> : vector<2x512xf32>
    %31 = tpu.matmul %29, %30, %cst_14 {dimension_numbers = #tpu.dot_dimension_numbers<[1], [0], [0], [1], [0, 0, 1, 1], [], []>} : vector<2x128xf32>, vector<128x512xf32>, vector<2x512xf32> -> vector<2x512xf32>
    %32 = vector.extract_strided_slice %10 {offsets = [1, 0, 0], sizes = [1, 2, 512], strides = [1, 1, 1]} : vector<8x2x512xf32> to vector<1x2x512xf32>
    %33 = vector.shape_cast %32 : vector<1x2x512xf32> to vector<2x512xf32>
    %34 = arith.addf %31, %33 : vector<2x512xf32>
    %35 = math.tanh %34 : vector<2x512xf32>
    %36 = vector.broadcast %11 : vector<1x512xf32> to vector<2x512xf32>
    %37 = arith.mulf %36, %35 : vector<2x512xf32>
    %38 = vector.broadcast %12 : vector<1x512xf32> to vector<2x512xf32>
    %39 = arith.addf %37, %38 : vector<2x512xf32>
    %40 = vector.extract_strided_slice %39 {offsets = [0, 0], sizes = [2, 128], strides = [1, 1]} : vector<2x512xf32> to vector<2x128xf32>
    %41 = vector.extract_strided_slice %39 {offsets = [0, 128], sizes = [2, 128], strides = [1, 1]} : vector<2x512xf32> to vector<2x128xf32>
    %42 = vector.extract_strided_slice %39 {offsets = [0, 256], sizes = [2, 128], strides = [1, 1]} : vector<2x512xf32> to vector<2x128xf32>
    %43 = vector.extract_strided_slice %39 {offsets = [0, 384], sizes = [2, 128], strides = [1, 1]} : vector<2x512xf32> to vector<2x128xf32>
    %44 = arith.mulf %41, %27 : vector<2x128xf32>
    %45 = arith.mulf %40, %42 : vector<2x128xf32>
    %46 = arith.addf %44, %45 : vector<2x128xf32>
    %47 = math.tanh %46 : vector<2x128xf32>
    %48 = arith.mulf %43, %47 : vector<2x128xf32>
    %c0_15 = arith.constant 0 : index
    %c0_16 = arith.constant 0 : index
    %49 = vector.load %arg5[%c0_15, %c0_16] : memref<128x512xf32, #tpu.memory_space<vmem>>, vector<128x512xf32>
    %cst_17 = arith.constant dense<0.000000e+00> : vector<2x512xf32>
    %50 = tpu.matmul %48, %49, %cst_17 {dimension_numbers = #tpu.dot_dimension_numbers<[1], [0], [0], [1], [0, 0, 1, 1], [], []>} : vector<2x128xf32>, vector<128x512xf32>, vector<2x512xf32> -> vector<2x512xf32>
    %51 = vector.extract_strided_slice %10 {offsets = [2, 0, 0], sizes = [1, 2, 512], strides = [1, 1, 1]} : vector<8x2x512xf32> to vector<1x2x512xf32>
    %52 = vector.shape_cast %51 : vector<1x2x512xf32> to vector<2x512xf32>
    %53 = arith.addf %50, %52 : vector<2x512xf32>
    %54 = math.tanh %53 : vector<2x512xf32>
    %55 = vector.broadcast %11 : vector<1x512xf32> to vector<2x512xf32>
    %56 = arith.mulf %55, %54 : vector<2x512xf32>
    %57 = vector.broadcast %12 : vector<1x512xf32> to vector<2x512xf32>
    %58 = arith.addf %56, %57 : vector<2x512xf32>
    %59 = vector.extract_strided_slice %58 {offsets = [0, 0], sizes = [2, 128], strides = [1, 1]} : vector<2x512xf32> to vector<2x128xf32>
    %60 = vector.extract_strided_slice %58 {offsets = [0, 128], sizes = [2, 128], strides = [1, 1]} : vector<2x512xf32> to vector<2x128xf32>
    %61 = vector.extract_strided_slice %58 {offsets = [0, 256], sizes = [2, 128], strides = [1, 1]} : vector<2x512xf32> to vector<2x128xf32>
    %62 = vector.extract_strided_slice %58 {offsets = [0, 384], sizes = [2, 128], strides = [1, 1]} : vector<2x512xf32> to vector<2x128xf32>
    %63 = arith.mulf %60, %46 : vector<2x128xf32>
    %64 = arith.mulf %59, %61 : vector<2x128xf32>
    %65 = arith.addf %63, %64 : vector<2x128xf32>
    %66 = math.tanh %65 : vector<2x128xf32>
    %67 = arith.mulf %62, %66 : vector<2x128xf32>
    %c0_18 = arith.constant 0 : index
    %c0_19 = arith.constant 0 : index
    %68 = vector.load %arg5[%c0_18, %c0_19] : memref<128x512xf32, #tpu.memory_space<vmem>>, vector<128x512xf32>
    %cst_20 = arith.constant dense<0.000000e+00> : vector<2x512xf32>
    %69 = tpu.matmul %67, %68, %cst_20 {dimension_numbers = #tpu.dot_dimension_numbers<[1], [0], [0], [1], [0, 0, 1, 1], [], []>} : vector<2x128xf32>, vector<128x512xf32>, vector<2x512xf32> -> vector<2x512xf32>
    %70 = vector.extract_strided_slice %10 {offsets = [3, 0, 0], sizes = [1, 2, 512], strides = [1, 1, 1]} : vector<8x2x512xf32> to vector<1x2x512xf32>
    %71 = vector.shape_cast %70 : vector<1x2x512xf32> to vector<2x512xf32>
    %72 = arith.addf %69, %71 : vector<2x512xf32>
    %73 = math.tanh %72 : vector<2x512xf32>
    %74 = vector.broadcast %11 : vector<1x512xf32> to vector<2x512xf32>
    %75 = arith.mulf %74, %73 : vector<2x512xf32>
    %76 = vector.broadcast %12 : vector<1x512xf32> to vector<2x512xf32>
    %77 = arith.addf %75, %76 : vector<2x512xf32>
    %78 = vector.extract_strided_slice %77 {offsets = [0, 0], sizes = [2, 128], strides = [1, 1]} : vector<2x512xf32> to vector<2x128xf32>
    %79 = vector.extract_strided_slice %77 {offsets = [0, 128], sizes = [2, 128], strides = [1, 1]} : vector<2x512xf32> to vector<2x128xf32>
    %80 = vector.extract_strided_slice %77 {offsets = [0, 256], sizes = [2, 128], strides = [1, 1]} : vector<2x512xf32> to vector<2x128xf32>
    %81 = vector.extract_strided_slice %77 {offsets = [0, 384], sizes = [2, 128], strides = [1, 1]} : vector<2x512xf32> to vector<2x128xf32>
    %82 = arith.mulf %79, %65 : vector<2x128xf32>
    %83 = arith.mulf %78, %80 : vector<2x128xf32>
    %84 = arith.addf %82, %83 : vector<2x128xf32>
    %85 = math.tanh %84 : vector<2x128xf32>
    %86 = arith.mulf %81, %85 : vector<2x128xf32>
    %c0_21 = arith.constant 0 : index
    %c0_22 = arith.constant 0 : index
    %87 = vector.load %arg5[%c0_21, %c0_22] : memref<128x512xf32, #tpu.memory_space<vmem>>, vector<128x512xf32>
    %cst_23 = arith.constant dense<0.000000e+00> : vector<2x512xf32>
    %88 = tpu.matmul %86, %87, %cst_23 {dimension_numbers = #tpu.dot_dimension_numbers<[1], [0], [0], [1], [0, 0, 1, 1], [], []>} : vector<2x128xf32>, vector<128x512xf32>, vector<2x512xf32> -> vector<2x512xf32>
    %89 = vector.extract_strided_slice %10 {offsets = [4, 0, 0], sizes = [1, 2, 512], strides = [1, 1, 1]} : vector<8x2x512xf32> to vector<1x2x512xf32>
    %90 = vector.shape_cast %89 : vector<1x2x512xf32> to vector<2x512xf32>
    %91 = arith.addf %88, %90 : vector<2x512xf32>
    %92 = math.tanh %91 : vector<2x512xf32>
    %93 = vector.broadcast %11 : vector<1x512xf32> to vector<2x512xf32>
    %94 = arith.mulf %93, %92 : vector<2x512xf32>
    %95 = vector.broadcast %12 : vector<1x512xf32> to vector<2x512xf32>
    %96 = arith.addf %94, %95 : vector<2x512xf32>
    %97 = vector.extract_strided_slice %96 {offsets = [0, 0], sizes = [2, 128], strides = [1, 1]} : vector<2x512xf32> to vector<2x128xf32>
    %98 = vector.extract_strided_slice %96 {offsets = [0, 128], sizes = [2, 128], strides = [1, 1]} : vector<2x512xf32> to vector<2x128xf32>
    %99 = vector.extract_strided_slice %96 {offsets = [0, 256], sizes = [2, 128], strides = [1, 1]} : vector<2x512xf32> to vector<2x128xf32>
    %100 = vector.extract_strided_slice %96 {offsets = [0, 384], sizes = [2, 128], strides = [1, 1]} : vector<2x512xf32> to vector<2x128xf32>
    %101 = arith.mulf %98, %84 : vector<2x128xf32>
    %102 = arith.mulf %97, %99 : vector<2x128xf32>
    %103 = arith.addf %101, %102 : vector<2x128xf32>
    %104 = math.tanh %103 : vector<2x128xf32>
    %105 = arith.mulf %100, %104 : vector<2x128xf32>
    %c0_24 = arith.constant 0 : index
    %c0_25 = arith.constant 0 : index
    %106 = vector.load %arg5[%c0_24, %c0_25] : memref<128x512xf32, #tpu.memory_space<vmem>>, vector<128x512xf32>
    %cst_26 = arith.constant dense<0.000000e+00> : vector<2x512xf32>
    %107 = tpu.matmul %105, %106, %cst_26 {dimension_numbers = #tpu.dot_dimension_numbers<[1], [0], [0], [1], [0, 0, 1, 1], [], []>} : vector<2x128xf32>, vector<128x512xf32>, vector<2x512xf32> -> vector<2x512xf32>
    %108 = vector.extract_strided_slice %10 {offsets = [5, 0, 0], sizes = [1, 2, 512], strides = [1, 1, 1]} : vector<8x2x512xf32> to vector<1x2x512xf32>
    %109 = vector.shape_cast %108 : vector<1x2x512xf32> to vector<2x512xf32>
    %110 = arith.addf %107, %109 : vector<2x512xf32>
    %111 = math.tanh %110 : vector<2x512xf32>
    %112 = vector.broadcast %11 : vector<1x512xf32> to vector<2x512xf32>
    %113 = arith.mulf %112, %111 : vector<2x512xf32>
    %114 = vector.broadcast %12 : vector<1x512xf32> to vector<2x512xf32>
    %115 = arith.addf %113, %114 : vector<2x512xf32>
    %116 = vector.extract_strided_slice %115 {offsets = [0, 0], sizes = [2, 128], strides = [1, 1]} : vector<2x512xf32> to vector<2x128xf32>
    %117 = vector.extract_strided_slice %115 {offsets = [0, 128], sizes = [2, 128], strides = [1, 1]} : vector<2x512xf32> to vector<2x128xf32>
    %118 = vector.extract_strided_slice %115 {offsets = [0, 256], sizes = [2, 128], strides = [1, 1]} : vector<2x512xf32> to vector<2x128xf32>
    %119 = vector.extract_strided_slice %115 {offsets = [0, 384], sizes = [2, 128], strides = [1, 1]} : vector<2x512xf32> to vector<2x128xf32>
    %120 = arith.mulf %117, %103 : vector<2x128xf32>
    %121 = arith.mulf %116, %118 : vector<2x128xf32>
    %122 = arith.addf %120, %121 : vector<2x128xf32>
    %123 = math.tanh %122 : vector<2x128xf32>
    %124 = arith.mulf %119, %123 : vector<2x128xf32>
    %c0_27 = arith.constant 0 : index
    %c0_28 = arith.constant 0 : index
    %125 = vector.load %arg5[%c0_27, %c0_28] : memref<128x512xf32, #tpu.memory_space<vmem>>, vector<128x512xf32>
    %cst_29 = arith.constant dense<0.000000e+00> : vector<2x512xf32>
    %126 = tpu.matmul %124, %125, %cst_29 {dimension_numbers = #tpu.dot_dimension_numbers<[1], [0], [0], [1], [0, 0, 1, 1], [], []>} : vector<2x128xf32>, vector<128x512xf32>, vector<2x512xf32> -> vector<2x512xf32>
    %127 = vector.extract_strided_slice %10 {offsets = [6, 0, 0], sizes = [1, 2, 512], strides = [1, 1, 1]} : vector<8x2x512xf32> to vector<1x2x512xf32>
    %128 = vector.shape_cast %127 : vector<1x2x512xf32> to vector<2x512xf32>
    %129 = arith.addf %126, %128 : vector<2x512xf32>
    %130 = math.tanh %129 : vector<2x512xf32>
    %131 = vector.broadcast %11 : vector<1x512xf32> to vector<2x512xf32>
    %132 = arith.mulf %131, %130 : vector<2x512xf32>
    %133 = vector.broadcast %12 : vector<1x512xf32> to vector<2x512xf32>
    %134 = arith.addf %132, %133 : vector<2x512xf32>
    %135 = vector.extract_strided_slice %134 {offsets = [0, 0], sizes = [2, 128], strides = [1, 1]} : vector<2x512xf32> to vector<2x128xf32>
    %136 = vector.extract_strided_slice %134 {offsets = [0, 128], sizes = [2, 128], strides = [1, 1]} : vector<2x512xf32> to vector<2x128xf32>
    %137 = vector.extract_strided_slice %134 {offsets = [0, 256], sizes = [2, 128], strides = [1, 1]} : vector<2x512xf32> to vector<2x128xf32>
    %138 = vector.extract_strided_slice %134 {offsets = [0, 384], sizes = [2, 128], strides = [1, 1]} : vector<2x512xf32> to vector<2x128xf32>
    %139 = arith.mulf %136, %122 : vector<2x128xf32>
    %140 = arith.mulf %135, %137 : vector<2x128xf32>
    %141 = arith.addf %139, %140 : vector<2x128xf32>
    %142 = math.tanh %141 : vector<2x128xf32>
    %143 = arith.mulf %138, %142 : vector<2x128xf32>
    %c0_30 = arith.constant 0 : index
    %c0_31 = arith.constant 0 : index
    %144 = vector.load %arg5[%c0_30, %c0_31] : memref<128x512xf32, #tpu.memory_space<vmem>>, vector<128x512xf32>
    %cst_32 = arith.constant dense<0.000000e+00> : vector<2x512xf32>
    %145 = tpu.matmul %143, %144, %cst_32 {dimension_numbers = #tpu.dot_dimension_numbers<[1], [0], [0], [1], [0, 0, 1, 1], [], []>} : vector<2x128xf32>, vector<128x512xf32>, vector<2x512xf32> -> vector<2x512xf32>
    %146 = vector.extract_strided_slice %10 {offsets = [7, 0, 0], sizes = [1, 2, 512], strides = [1, 1, 1]} : vector<8x2x512xf32> to vector<1x2x512xf32>
    %147 = vector.shape_cast %146 : vector<1x2x512xf32> to vector<2x512xf32>
    %148 = arith.addf %145, %147 : vector<2x512xf32>
    %149 = math.tanh %148 : vector<2x512xf32>
    %150 = vector.broadcast %11 : vector<1x512xf32> to vector<2x512xf32>
    %151 = arith.mulf %150, %149 : vector<2x512xf32>
    %152 = vector.broadcast %12 : vector<1x512xf32> to vector<2x512xf32>
    %153 = arith.addf %151, %152 : vector<2x512xf32>
    %154 = vector.extract_strided_slice %153 {offsets = [0, 0], sizes = [2, 128], strides = [1, 1]} : vector<2x512xf32> to vector<2x128xf32>
    %155 = vector.extract_strided_slice %153 {offsets = [0, 128], sizes = [2, 128], strides = [1, 1]} : vector<2x512xf32> to vector<2x128xf32>
    %156 = vector.extract_strided_slice %153 {offsets = [0, 256], sizes = [2, 128], strides = [1, 1]} : vector<2x512xf32> to vector<2x128xf32>
    %157 = vector.extract_strided_slice %153 {offsets = [0, 384], sizes = [2, 128], strides = [1, 1]} : vector<2x512xf32> to vector<2x128xf32>
    %158 = arith.mulf %155, %141 : vector<2x128xf32>
    %159 = arith.mulf %154, %156 : vector<2x128xf32>
    %160 = arith.addf %158, %159 : vector<2x128xf32>
    %161 = math.tanh %160 : vector<2x128xf32>
    %162 = arith.mulf %157, %161 : vector<2x128xf32>
    %c0_33 = arith.constant 0 : index
    %c0_34 = arith.constant 0 : index
    %163 = vector.load %arg5[%c0_33, %c0_34] : memref<128x512xf32, #tpu.memory_space<vmem>>, vector<128x512xf32>
    %cst_35 = arith.constant dense<0.000000e+00> : vector<2x512xf32>
    %164 = tpu.matmul %162, %163, %cst_35 {dimension_numbers = #tpu.dot_dimension_numbers<[1], [0], [0], [1], [0, 0, 1, 1], [], []>} : vector<2x128xf32>, vector<128x512xf32>, vector<2x512xf32> -> vector<2x512xf32>
    %165 = vector.extract_strided_slice %10 {offsets = [0, 0, 0], sizes = [1, 2, 512], strides = [1, 1, 1]} : vector<8x2x512xf32> to vector<1x2x512xf32>
    %166 = vector.shape_cast %165 : vector<1x2x512xf32> to vector<2x512xf32>
    %167 = arith.addf %164, %166 : vector<2x512xf32>
    %168 = math.tanh %167 : vector<2x512xf32>
    %169 = vector.broadcast %11 : vector<1x512xf32> to vector<2x512xf32>
    %170 = arith.mulf %169, %168 : vector<2x512xf32>
    %171 = vector.broadcast %12 : vector<1x512xf32> to vector<2x512xf32>
    %172 = arith.addf %170, %171 : vector<2x512xf32>
    %173 = vector.extract_strided_slice %172 {offsets = [0, 0], sizes = [2, 128], strides = [1, 1]} : vector<2x512xf32> to vector<2x128xf32>
    %174 = vector.extract_strided_slice %172 {offsets = [0, 128], sizes = [2, 128], strides = [1, 1]} : vector<2x512xf32> to vector<2x128xf32>
    %175 = vector.extract_strided_slice %172 {offsets = [0, 256], sizes = [2, 128], strides = [1, 1]} : vector<2x512xf32> to vector<2x128xf32>
    %176 = vector.extract_strided_slice %172 {offsets = [0, 384], sizes = [2, 128], strides = [1, 1]} : vector<2x512xf32> to vector<2x128xf32>
    %177 = arith.mulf %174, %160 : vector<2x128xf32>
    %178 = arith.mulf %173, %175 : vector<2x128xf32>
    %179 = arith.addf %177, %178 : vector<2x128xf32>
    %180 = math.tanh %179 : vector<2x128xf32>
    %181 = arith.mulf %176, %180 : vector<2x128xf32>
    %c0_36 = arith.constant 0 : index
    %c0_37 = arith.constant 0 : index
    %182 = vector.load %arg8[%c0_36, %c0_37] : memref<1x128xf32, #tpu.memory_space<vmem>>, vector<1x128xf32>
    %183 = vector.broadcast %182 : vector<1x128xf32> to vector<2x128xf32>
    %184 = arith.mulf %181, %183 : vector<2x128xf32>
    %cst_38 = arith.constant dense<0.000000e+00> : vector<2xf32>
    %185 = vector.multi_reduction <add>, %184, %cst_38 [1] : vector<2x128xf32> to vector<2xf32>
    %186 = vector.shape_cast %185 : vector<2xf32> to vector<2x1xf32>
    %c0_39 = arith.constant 0 : index
    %c0_40 = arith.constant 0 : index
    %187 = vector.load %arg9[%c0_39, %c0_40] : memref<1x1xf32, #tpu.memory_space<vmem>>, vector<1x1xf32>
    %188 = vector.broadcast %187 : vector<1x1xf32> to vector<2x1xf32>
    %189 = arith.addf %186, %188 : vector<2x1xf32>
    %c0_41 = arith.constant 0 : index
    %c0_42 = arith.constant 0 : index
    %190 = vector.load %arg10[%c0_41, %c0_42] : memref<2x1xf32, #tpu.memory_space<vmem>>, vector<2x1xf32>
    tpu.vector_store %arg10[%c0_41, %c0_42], %189 {strides = array<i32>} : memref<2x1xf32, #tpu.memory_space<vmem>>, vector<2x1xf32>,
    return
  }
  func.func @transform_0(%arg0: i32) -> (i32, i32) {
    %c0_i32 = arith.constant 0 : i32
    %c0_i32_0 = arith.constant 0 : i32
    %c0_i32_1 = arith.constant 0 : i32
    return %c0_i32, %c0_i32_0 : i32, i32
  }
  func.func @transform_1(%arg0: i32) -> (i32, i32) {
    %c0_i32 = arith.constant 0 : i32
    %c0_i32_0 = arith.constant 0 : i32
    %c0_i32_1 = arith.constant 0 : i32
    return %c0_i32, %c0_i32_0 : i32, i32
  }
  func.func @transform_2(%arg0: i32) -> (i32, i32) {
    %c0_i32 = arith.constant 0 : i32
    %c0_i32_0 = arith.constant 0 : i32
    %c0_i32_1 = arith.constant 0 : i32
    return %c0_i32, %c0_i32_0 : i32, i32
  }
  func.func @transform_3(%arg0: i32) -> (i32, i32) {
    %c0_i32 = arith.constant 0 : i32
    %c0_i32_0 = arith.constant 0 : i32
    %c0_i32_1 = arith.constant 0 : i32
    return %c0_i32, %c0_i32_0 : i32, i32
  }
  func.func @transform_4(%arg0: i32) -> (i32, i32) {
    %c0_i32 = arith.constant 0 : i32
    %c0_i32_0 = arith.constant 0 : i32
    %c0_i32_1 = arith.constant 0 : i32
    return %c0_i32, %c0_i32_0 : i32, i32
  }
  func.func @transform_5(%arg0: i32) -> (i32, i32) {
    %c0_i32 = arith.constant 0 : i32
    %c0_i32_0 = arith.constant 0 : i32
    %c0_i32_1 = arith.constant 0 : i32
    return %c0_i32, %c0_i32_0 : i32, i32
  }
  func.func @transform_6(%arg0: i32) -> (i32, i32) {
    %c0_i32 = arith.constant 0 : i32
    %c0_i32_0 = arith.constant 0 : i32
    %c0_i32_1 = arith.constant 0 : i32
    return %c0_i32, %c0_i32_0 : i32, i32
  }
  func.func @transform_7(%arg0: i32) -> (i32, i32) {
    %c0_i32 = arith.constant 0 : i32
    %c0_i32_0 = arith.constant 0 : i32
    %c0_i32_1 = arith.constant 0 : i32
    return %c0_i32, %c0_i32_0 : i32, i32
  }
  func.func @transform_8(%arg0: i32) -> (i32, i32) {
    %c0_i32 = arith.constant 0 : i32
    %c0_i32_0 = arith.constant 0 : i32
    %c0_i32_1 = arith.constant 0 : i32
    return %c0_i32, %c0_i32_0 : i32, i32
  }
  func.func @transform_9(%arg0: i32) -> (i32, i32) {
    %c0_i32 = arith.constant 0 : i32
    %c0_i32_0 = arith.constant 0 : i32
    %c0_i32_1 = arith.constant 0 : i32
    return %c0_i32, %c0_i32_0 : i32, i32
  }
}

</mosaic_0001>

<bundles_post_ra>
// kernel: tpu_custom_call.1
= control target key start
LH: loop header
LB: loop body
LE: loop exit
PB: predicated region body
PF: predicated region fallthrough
CT: control target
= control target key end

     0   :  { %s3368_s0 = inlined_call_operand.vmem [shape: f32[16,8], index: 0, kind: input, shape index: {}]   ;;  %s3369_s1 = inlined_call_operand.hbm [shape: f32[8,512], index: 1, kind: input, shape index: {}]   ;;  %s3370_s2 = inlined_call_operand.vmem [shape: f32[1,512], index: 2, kind: input, shape index: {}]   ;;  %s3371_s3 = inlined_call_operand.vmem [shape: f32[1,512], index: 3, kind: input, shape index: {}]   ;;  %s3372_s4 = inlined_call_operand.hbm [shape: f32[128,512], index: 4, kind: input, shape index: {}]   ;;  %s3373_s5 = inlined_call_operand.vmem [shape: f32[1,512], index: 5, kind: input, shape index: {}]   ;;  %s3374_s6 = inlined_call_operand.vmem [shape: f32[1,512], index: 6, kind: input, shape index: {}]   ;;  %s3375_s7 = inlined_call_operand.vmem [shape: f32[1,128], index: 7, kind: input, shape index: {}]   ;;  %s3376_s8 = inlined_call_operand.<no memory space> [shape: f32[1,1], index: 8, kind: input, shape index: {}]   ;;  %s3377_s9 = inlined_call_operand.vmem [shape: f32[2,1], index: 9, kind: output, shape index: {}]  }
   0x1   :  { %v14_v0 = vstv %s3376_s8 }
   0x2   :  { %15 = vst [vmem:[#allocation2] sm:$0x1] %v14_v0 }
   0x3   :  { %16 = vsyncpa [#allocation4], 0 }
   0x4   :  { %17 = vsyncpa [#allocation6], 0  ;;  %s2657_s11 = smov [#allocation3]   ;;  %s2658_s13 = smov [#allocation5]  }
   0x5   :  { %s26_s12 = sshll.u32 %s2657_s11, 4  ;;  %s39_s14 = sshll.u32 %s2658_s13, 4  ;;  %s27_s12 = int_to_ptr.vmem [resolvable:$true] %s26_s12  ;;  %s2716_s14 = int_to_ptr.vmem [resolvable:$true] %s39_s14 }
   0x6   :  { %s2609_s17 = scalar_lea.hbm %s3369_s1, 512 }
   0x7   :  { %p2610_p0 = scmp.ne.s32.totalorder %s3369_s1, %s2609_s17  ;;  %p2613_p1 = scmp.lt.u32.totalorder %s2609_s17, %s3369_s1 }
   0x9   :  { %p2615_p2 = pnand %p2613_p1, %p2610_p0 }
   0xb   :  { %2618 = shalt.err (!%p2615_p2)
}
   0xc   :  { %s2619_s21 = scalar_lea.vmem %s27_s12, 512  ;;  %p2624_p4 = scmp.lt.s32.totalorder %s27_s12, %s27_s12 }
   0xd   :  { %p2620_p3 = scmp.ne.s32.totalorder %s27_s12, %s2619_s21  ;;  %p2625_p5 = scmp.lt.s32.totalorder %s2619_s21, %s2619_s21 }
   0xf   :  { %p2626_p6 = por %p2625_p5, %p2624_p4 }
  0x11   :  { %p2627_p7 = pnand %p2626_p6, %p2620_p3 }
  0x13   :  { %2630 = shalt.err (!%p2627_p7)
}
  0x14   :  { %29 = dma.hbm_to_vmem [thread:$0]  %s3369_s1, 512, %s27_s12, [#allocation4]  }
  0x15   :  { %s2631_s26 = scalar_lea.hbm %s3372_s4, 8192 }
  0x16   :  { %p2632_p8 = scmp.ne.s32.totalorder %s3372_s4, %s2631_s26  ;;  %p2635_p9 = scmp.lt.u32.totalorder %s2631_s26, %s3372_s4 }
  0x18   :  { %p2637_p10 = pnand %p2635_p9, %p2632_p8 }
  0x1a   :  { %2640 = shalt.err (!%p2637_p10)
}
  0x1b   :  { %s2641_s10 = scalar_lea.vmem %s2716_s14, 8192  ;;  %p2646_p12 = scmp.lt.s32.totalorder %s2716_s14, %s2716_s14 }
  0x1c   :  { %p2642_p11 = scmp.ne.s32.totalorder %s2716_s14, %s2641_s10  ;;  %p2647_p13 = scmp.lt.s32.totalorder %s2641_s10, %s2641_s10 }
  0x1e   :  { %p2648_p0 = por %p2647_p13, %p2646_p12 }
  0x20   :  { %p2649_p1 = pnand %p2648_p0, %p2642_p11 }
  0x22   :  { %2652 = shalt.err (!%p2649_p1)
}
  0x23   :  { %s2659_s1 = smov 512   ;;  %s2660_s11 = smov 32  }
  0x24   :  { %45 = dma.hbm_to_vmem [thread:$0]  %s3372_s4, 8192, %s2716_s14, [#allocation6], %s2659_s1, %s2659_s1, %s2660_s11  }
  0x25   :  { %2653 = dma.done.wait [#allocation4], 512  }
  0x26   :  { %2654 = vsyncadd [#allocation4], 4294966784 }
  0x27   :  { %2655 = dma.done.wait [#allocation6], 8192  }
  0x28   :  { %2656 = vsyncadd [#allocation6], 4294959104  ;;  %v3378_v1 = vmov 0.0   ;;  %v63_v2 = vld [vmem:[#allocation3 + $0x8] sm:$0xff]  ;;  %v65_v3 = vld [vmem:[#allocation3 + $0x18] sm:$0xff]  ;;  %vm88_vm0 = vcmask 64512   ;;  %v68_v7 = vlaneseq }
  0x29   :  { %159 = vmatprep.mubr.f32.mxu0 %v3378_v1  ;;  %236 = vmatprep.mubr.f32.mxu1 %v3378_v1  ;;  %v62_v4 = vld [vmem:[#allocation3] sm:$0xff]  ;;  %v64_v5 = vld [vmem:[#allocation3 + $0x10] sm:$0xff]  ;;  %v2662_v10 = vmov 1983009808   ;;  %v462_v27 = vld [vmem:[#allocation5 + $0x8] sm:$0xff]  ;;  %vm1981_vm1 = vcmask 1041408  }
  0x2a   :  { %95 = vmatprep.subr.mxu0 %v63_v2  ;;  %172 = vmatprep.subr.mxu1 %v65_v3  ;;  %v60_v6 = vld [vmem:[%s3368_s0] sm:$0xff]  ;;  %v69_v8 = vshrl.u32 %v68_v7, 7  ;;  %v262_v11 = vunpack.c.l.s4 %v2662_v10  ;;  %v466_v28 = vld [vmem:[#allocation5 + $0x28] sm:$0xff]  ;;  %v463_v36 = vld [vmem:[#allocation5 + $0x10] sm:$0xff]  ;;  %vm1993_vm2 = vcmask 1024  }
  0x2b   :  { %96 = vmatpush1.msra.mxu0 %v62_v4  ;;  %173 = vmatpush1.msra.mxu1 %v64_v5  ;;  %v337_v12 = vld [vmem:[%s3371_s3] sm:$0xf]  ;;  %v2777_v30 = vpack.c.bf16 %v466_v28, %v462_v27  ;;  %v467_v37 = vld [vmem:[#allocation5 + $0x30] sm:$0xff]  ;;  %v470_v39 = vld [vmem:[#allocation5 + $0x48] sm:$0xff] }
  0x2c   :  { %2001 = vmatmul.mubr.msk.f32.vlgmr.msra.gmra.mrb[0].mxu0 %vm88_vm0, %v60_v6  ;;  %2003 = vmatmul.mubr.msk.f32.vlgmr.msra.gmra.mrb[0].mxu1 %vm88_vm0, %v60_v6  ;;  %v2756_v9 = vsub.s32 0, %v69_v8  ;;  %v2761_v13 = vsub.s32 2, %v69_v8  ;;  %v2763_v14 = vsub.s32 1, %v69_v8  ;;  %v263_v15 = vunpack.c.0.s8 %v262_v11  ;;  %v464_v29 = vld [vmem:[#allocation5 + $0x18] sm:$0xff]  ;;  %v461_v32 = vld [vmem:[#allocation5] sm:$0xff]  ;;  %v474_v40 = vld [vmem:[#allocation5 + $0x68] sm:$0xff] }
  0x2d   :  { %165 = vmatprep.mubr.f32.mxu0 %v3378_v1  ;;  %242 = vmatprep.mubr.f32.mxu1 %v3378_v1  ;;  %v2766_v17 = vsub.s32 3, %v69_v8  ;;  %v468_v31 = vld [vmem:[#allocation5 + $0x38] sm:$0xff]  ;;  %v465_v33 = vld [vmem:[#allocation5 + $0x20] sm:$0xff]  ;;  %v2784_v38 = vpack.c.bf16 %v467_v37, %v463_v36  ;;  %v2789_v42 = vpack.c.bf16 %v474_v40, %v470_v39  ;;  %v471_v48 = vld [vmem:[#allocation5 + $0x50] sm:$0xff] }
  0x2e   :  { %v342_v16 = vrot.slane %v337_v12, %v2756_v9  ;;  %v350_v18 = vrot.slane %v337_v12, %v2761_v13  ;;  %v346_v19 = vrot.slane %v337_v12, %v2763_v14  ;;  %v2770_v20 = vsub.s32 %v263_v15, %v69_v8  ;;  %2008 = vmatprep.subr.bf16.mxu0 %v2777_v30  ;;  %v472_v41 = vld [vmem:[#allocation5 + $0x58] sm:$0xff]  ;;  %v469_v44 = vld [vmem:[#allocation5 + $0x40] sm:$0xff]  ;;  %v475_v49 = vld [vmem:[#allocation5 + $0x70] sm:$0xff] }
  0x2f   :  { %v354_v21 = vrot.slane %v337_v12, %v2766_v17  ;;  %v2779_v34 = vpack.c.bf16 %v468_v31, %v464_v29  ;;  %v2781_v35 = vpack.c.bf16 %v465_v33, %v461_v32  ;;  %v476_v43 = vld [vmem:[#allocation5 + $0x78] sm:$0xff]  ;;  %v473_v45 = vld [vmem:[#allocation5 + $0x60] sm:$0xff]  ;;  %v2796_v50 = vpack.c.bf16 %v475_v49, %v471_v48  ;;  %v478_v51 = vld [vmem:[#allocation5 + $0x88] sm:$0xff] }
  0x30   :  { %3396 = vst [vmem:[#allocation9_spill] sm:$0xff] %v2770_v20  ;;  %v355_v22 = vcombine.low %v342_v16, %v346_v19  ;;  %v2791_v46 = vpack.c.bf16 %v476_v43, %v472_v41  ;;  %v2793_v47 = vpack.c.bf16 %v473_v45, %v469_v44  ;;  %v482_v52 = vld [vmem:[#allocation5 + $0xa8] sm:$0xff]  ;;  %v480_v53 = vld [vmem:[#allocation5 + $0x98] sm:$0xff]  ;;  %v477_v56 = vld [vmem:[#allocation5 + $0x80] sm:$0xff] }
  0x31   :  { %v356_v23 = vcombine.low %v350_v18, %v354_v21  ;;  %2040 = vmatprep.subr.bf16.mxu1 %v2779_v34  ;;  %2010 = vmatpush1.bf16.msra.mxu0 %v2781_v35  ;;  %v2801_v54 = vpack.c.bf16 %v482_v52, %v478_v51  ;;  %v484_v55 = vld [vmem:[#allocation5 + $0xb8] sm:$0xff]  ;;  %v481_v57 = vld [vmem:[#allocation5 + $0xa0] sm:$0xff]  ;;  %v479_v60 = vld [vmem:[#allocation5 + $0x90] sm:$0xff] }
  0x32   :  { %v363_v24 = vrot.slane %v355_v22, %v2770_v20  ;;  %2042 = vmatpush1.bf16.msra.mxu1 %v2784_v38  ;;  %2012 = vmatprep.subr.bf16.mxu0 %v2789_v42  ;;  %v2803_v58 = vpack.c.bf16 %v484_v55, %v480_v53  ;;  %v2805_v59 = vpack.c.bf16 %v481_v57, %v477_v56  ;;  %v483_v61 = vld [vmem:[#allocation5 + $0xb0] sm:$0xff]  ;;  %v486_v63 = vld [vmem:[#allocation5 + $0xc8] sm:$0xff]  ;;  %v488_v2 = vld [vmem:[#allocation5 + $0xd8] sm:$0xff] }
  0x33   :  { %v370_v25 = vrot.slane %v356_v23, %v2770_v20  ;;  %2044 = vmatprep.subr.bf16.mxu1 %v2791_v46  ;;  %v2808_v62 = vpack.c.bf16 %v483_v61, %v479_v60  ;;  %v490_v0 = vld [vmem:[#allocation5 + $0xe8] sm:$0xff]  ;;  %v492_v4 = vld [vmem:[#allocation5 + $0xf8] sm:$0xff]  ;;  %v485_v5 = vld [vmem:[#allocation5 + $0xc0] sm:$0xff] }
  0x34   :  { %v2813_v3 = vpack.c.bf16 %v490_v0, %v486_v63  ;;  %v489_v6 = vld [vmem:[#allocation5 + $0xe0] sm:$0xff]  ;;  %v2815_v7 = vpack.c.bf16 %v492_v4, %v488_v2  ;;  %v487_v10 = vld [vmem:[#allocation5 + $0xd0] sm:$0xff]  ;;  %v494_v15 = vld [vmem:[#allocation5 + $0x108] sm:$0xff] }
  0x35   :  { %v2775_v26 = vcombine.low %v363_v24, %v370_v25  ;;  %2014 = vmatpush1.bf16.msra.mxu0 %v2793_v47  ;;  %v2817_v8 = vpack.c.bf16 %v489_v6, %v485_v5  ;;  %v491_v11 = vld [vmem:[#allocation5 + $0xf0] sm:$0xff]  ;;  %v498_v16 = vld [vmem:[#allocation5 + $0x128] sm:$0xff]  ;;  %v496_v18 = vld [vmem:[#allocation5 + $0x118] sm:$0xff] }
  0x36   :  { %2046 = vmatpush1.bf16.msra.mxu1 %v2796_v50  ;;  %2016 = vmatprep.subr.bf16.mxu0 %v2801_v54  ;;  %v2820_v12 = vpack.c.bf16 %v491_v11, %v487_v10  ;;  %v2825_v19 = vpack.c.bf16 %v498_v16, %v494_v15  ;;  %v500_v21 = vld [vmem:[#allocation5 + $0x138] sm:$0xff]  ;;  %v493_v22 = vld [vmem:[#allocation5 + $0x100] sm:$0xff]  ;;  %v495_v27 = vld [vmem:[#allocation5 + $0x110] sm:$0xff] }
  0x37   :  { %2048 = vmatprep.subr.bf16.mxu1 %v2803_v58  ;;  %v497_v23 = vld [vmem:[#allocation5 + $0x120] sm:$0xff]  ;;  %v2827_v24 = vpack.c.bf16 %v500_v21, %v496_v18  ;;  %v499_v28 = vld [vmem:[#allocation5 + $0x130] sm:$0xff]  ;;  %v502_v29 = vld [vmem:[#allocation5 + $0x148] sm:$0xff] }
  0x38   :  { %v2829_v25 = vpack.c.bf16 %v497_v23, %v493_v22  ;;  %v2832_v31 = vpack.c.bf16 %v499_v28, %v495_v27  ;;  %v506_v32 = vld [vmem:[#allocation5 + $0x168] sm:$0xff]  ;;  %v504_v33 = vld [vmem:[#allocation5 + $0x158] sm:$0xff]  ;;  %v501_v40 = vld [vmem:[#allocation5 + $0x140] sm:$0xff] }
  0x39   :  { %2018 = vmatpush1.bf16.msra.mxu0 %v2805_v59  ;;  %v508_v36 = vld [vmem:[#allocation5 + $0x178] sm:$0xff]  ;;  %v2836_v37 = vpack.c.bf16 %v506_v32, %v502_v29  ;;  %v505_v41 = vld [vmem:[#allocation5 + $0x160] sm:$0xff]  ;;  %v503_v43 = vld [vmem:[#allocation5 + $0x150] sm:$0xff] }
  0x3a   :  { %2050 = vmatpush1.bf16.msra.mxu1 %v2808_v62  ;;  %2020 = vmatprep.subr.bf16.mxu0 %v2813_v3  ;;  %v2838_v39 = vpack.c.bf16 %v508_v36, %v504_v33  ;;  %v2841_v44 = vpack.c.bf16 %v505_v41, %v501_v40  ;;  %v507_v45 = vld [vmem:[#allocation5 + $0x170] sm:$0xff]  ;;  %v510_v48 = vld [vmem:[#allocation5 + $0x188] sm:$0xff]  ;;  %v512_v53 = vld [vmem:[#allocation5 + $0x198] sm:$0xff] }
  0x3b   :  { %2052 = vmatprep.subr.bf16.mxu1 %v2815_v7  ;;  %v514_v49 = vld [vmem:[#allocation5 + $0x1a8] sm:$0xff]  ;;  %v2845_v51 = vpack.c.bf16 %v507_v45, %v503_v43  ;;  %v516_v55 = vld [vmem:[#allocation5 + $0x1b8] sm:$0xff]  ;;  %v509_v56 = vld [vmem:[#allocation5 + $0x180] sm:$0xff] }
  0x3c   :  { %v2847_v52 = vpack.c.bf16 %v514_v49, %v510_v48  ;;  %v2849_v57 = vpack.c.bf16 %v516_v55, %v512_v53  ;;  %v513_v60 = vld [vmem:[#allocation5 + $0x1a0] sm:$0xff]  ;;  %v511_v61 = vld [vmem:[#allocation5 + $0x190] sm:$0xff]  ;;  %v518_v4 = vld [vmem:[#allocation5 + $0x1c8] sm:$0xff] }
  0x3d   :  { %2022 = vmatpush1.bf16.msra.mxu0 %v2817_v8  ;;  %v515_v63 = vld [vmem:[#allocation5 + $0x1b0] sm:$0xff]  ;;  %v2852_v0 = vpack.c.bf16 %v513_v60, %v509_v56  ;;  %v61_v2 = vld [vmem:[%s3368_s0 + $0x8] sm:$0xff]  ;;  %v520_v11 = vld [vmem:[#allocation5 + $0x1d8] sm:$0xff] }
  0x3e   :  { %2054 = vmatpush1.bf16.msra.mxu1 %v2820_v12  ;;  %2024 = vmatprep.subr.bf16.mxu0 %v2825_v19  ;;  %v522_v5 = vld [vmem:[#allocation5 + $0x1e8] sm:$0xff]  ;;  %v2859_v6 = vpack.c.bf16 %v515_v63, %v511_v61  ;;  %v524_v15 = vld [vmem:[#allocation5 + $0x1f8] sm:$0xff]  ;;  %v517_v16 = vld [vmem:[#allocation5 + $0x1c0] sm:$0xff] }
  0x3f   :  { %2056 = vmatprep.subr.bf16.mxu1 %v2827_v24  ;;  %v2861_v10 = vpack.c.bf16 %v522_v5, %v518_v4  ;;  %2002 = vmatmul.mubr.msk.f32.gmra.mrb[2].mxu0 %vm88_vm0, %v61_v2  ;;  %v2865_v18 = vpack.c.bf16 %v524_v15, %v520_v11  ;;  %v521_v21 = vld [vmem:[#allocation5 + $0x1e0] sm:$0xff]  ;;  %v519_v22 = vld [vmem:[#allocation5 + $0x1d0] sm:$0xff] }
  0x40   :  { %v523_v23 = vld [vmem:[#allocation5 + $0x1f0] sm:$0xff]  ;;  %2004 = vmatmul.mubr.msk.f32.gmra.mrb[2].mxu1 %vm88_vm0, %v61_v2  ;;  %611 = vmatprep.mubr.f32.mxu0 %v3378_v1  ;;  %v2870_v27 = vpack.c.bf16 %v521_v21, %v517_v16  ;;  %v66_v29 = vld [vmem:[%s3370_s2] sm:$0xf] }
  0x41   :  { %2026 = vmatpush1.bf16.msra.mxu0 %v2829_v25  ;;  %682 = vmatprep.mubr.f32.mxu1 %v3378_v1  ;;  %v2875_v28 = vpack.c.bf16 %v523_v23, %v519_v22  ;;  %v2886_v32 = vrot.slane %v66_v29, %v2756_v9  ;;  %v2889_v33 = vrot.slane %v66_v29, %v2761_v13 }
  0x42   :  { %2058 = vmatpush1.bf16.msra.mxu1 %v2832_v31  ;;  %2028 = vmatprep.subr.bf16.mxu0 %v2836_v37  ;;  %v2892_v36 = vrot.slane %v66_v29, %v2763_v14  ;;  %v2895_v40 = vrot.slane %v66_v29, %v2766_v17  ;;  %v381_v29 = vld [vmem:[%s3373_s5] sm:$0xf] }
  0x43   :  { %2060 = vmatprep.subr.bf16.mxu1 %v2838_v39 }
  0x45   :  { %2030 = vmatpush1.bf16.msra.mxu0 %v2841_v44 }
  0x46   :  { %2062 = vmatpush1.bf16.msra.mxu1 %v2845_v51  ;;  %2032 = vmatprep.subr.bf16.mxu0 %v2847_v52 }
  0x47   :  { %2064 = vmatprep.subr.bf16.mxu1 %v2849_v57 }
  0x49   :  { %2034 = vmatpush1.bf16.msra.mxu0 %v2852_v0 }
  0x4a   :  { %2066 = vmatpush1.bf16.msra.mxu1 %v2859_v6  ;;  %2036 = vmatprep.subr.bf16.mxu0 %v2861_v10 }
  0x4b   :  { %2068 = vmatprep.subr.bf16.mxu1 %v2865_v18 }
  0x4d   :  { %2038 = vmatpush1.bf16.msra.mxu0 %v2870_v27 }
  0x4e   :  { %2070 = vmatpush1.bf16.msra.mxu1 %v2875_v28  ;;  %2072 = vmatprep.subr.bf16.mxu0 %v2777_v30 }
  0x4f   :  { %2104 = vmatprep.subr.bf16.mxu1 %v2779_v34 }
  0xff   :  { %v161_v41 = vpop.f32.mrb[0].mxu0  ;;  %v238_v43 = vpop.f32.mrb[0].mxu1 }
 0x100   :  { %v162_v45 = vadd.f32 %v161_v41, %v2886_v32  ;;  %v239_v48 = vadd.f32 %v238_v43, %v2889_v33  ;;  %v163_v49 = vpop.f32.mrb[1].mxu0  ;;  %v240_v53 = vpop.f32.mrb[1].mxu1  ;;  %v382_v41 = vld [vmem:[%s3374_s6] sm:$0xf]  ;;  %v2931_v43 = vrot.slane %v381_v29, %v2756_v9 }
 0x101   :  { %v164_v55 = vadd.f32 %v163_v49, %v2892_v36  ;;  %v241_v56 = vadd.f32 %v240_v53, %v2895_v40  ;;  %v2937_v49 = vrot.slane %v381_v29, %v2763_v14 }
 0x103   :  { %v257_v60 = vcombine.low %v162_v45, %v164_v55  ;;  %v258_v61 = vcombine.high %v162_v45, %v164_v55  ;;  %v259_v63 = vcombine.low %v239_v48, %v241_v56  ;;  %v260_v2 = vcombine.high %v239_v48, %v241_v56 }
 0x104   :  { %v2934_v48 = vrot.slane %v381_v29, %v2761_v13  ;;  %v2941_v56 = vrot.slane %v382_v41, %v2756_v9 }
 0x105   :  { %v2902_v4 = vrot.slane %v257_v60, %v2770_v20  ;;  %v2905_v5 = vrot.slane %v258_v61, %v2770_v20  ;;  %v2908_v11 = vrot.slane %v259_v63, %v2770_v20  ;;  %v2911_v15 = vrot.slane %v260_v2, %v2770_v20 }
 0x106   :  { %v2944_v60 = vrot.slane %v382_v41, %v2761_v13  ;;  %v2947_v61 = vrot.slane %v382_v41, %v2763_v14  ;;  %v2960_v14 = vrot.slane %v381_v29, %v2766_v17 }
 0x107   :  { %3397 = vst [vmem:[#allocation10_spill] sm:$0xff] %v2905_v5  ;;  %3398 = vst [vmem:[#allocation11_spill] sm:$0xff] %v2911_v15  ;;  %v2915_v16 = vcombine.low %v2902_v4, %v2908_v11 }
 0x109   :  { %3399 = vst [vmem:[#allocation12_spill] sm:$0xff] %v2915_v16  ;;  %2525 = vtanh.f32 %v2915_v16 }
 0x113   :  { %v2526_v45 = vpop.eup %2525 }
 0x114   :  { %v406_v53 = vcombine.high %v2526_v45, %v2526_v45  ;;  %v413_v55 = vrot.slane %v2526_v45, %v2770_v20 }
 0x116   :  { %v421_v63 = vcombine.high %v413_v55, %v413_v55  ;;  %v427_v2 = vmul.f32 %v413_v55, %v2931_v43  ;;  %v420_v23 = vrot.slane %v406_v53, %v2770_v20  ;;  %v2963_v55 = vrot.slane %v382_v41, %v2766_v17  ;;  %v167_v17 = vpop.f32.mrb[2].mxu0 }
 0x118   :  { %v428_v22 = vmul.f32 %v421_v63, %v2937_v49  ;;  %v429_v21 = vmul.f32 %v420_v23, %v2934_v48  ;;  %v452_v45 = vadd.f32 %v2941_v56, %v427_v2  ;;  %v422_v53 = vcombine.high %v420_v23, %v420_v23 }
 0x11a   :  { %v453_v9 = vadd.f32 %v2947_v61, %v428_v22  ;;  %v454_v1 = vadd.f32 %v2944_v60, %v429_v21  ;;  %v430_v63 = vmul.f32 %v422_v53, %v2960_v14  ;;  %v169_v21 = vpop.f32.mrb[3].mxu0 }
 0x11b   :  { %v170_v29 = vadd.f32 %v169_v21, %v2892_v36 }
 0x11c   :  { %v456_v13 = vmul.f32 0.0, %v453_v9  ;;  %v457_v16 = vmul.f32 %v454_v1, %v452_v45  ;;  %v455_v2 = vadd.f32 %v2963_v55, %v430_v63  ;;  %v3400_v1 = vmov 0.0  }
 0x11e   :  { %v2956_v15 = vadd.f32 %v457_v16, %v456_v13  ;;  %v244_v16 = vpop.f32.mrb[2].mxu1 }
 0x11f   :  { %v245_v23 = vadd.f32 %v244_v16, %v2889_v33  ;;  %v246_v41 = vpop.f32.mrb[3].mxu1  ;;  %v3405_v16 = vcombine.high %v2902_v4, %v2908_v11 }
 0x120   :  { %2527 = vtanh.f32 %v2956_v15  ;;  %v247_v45 = vadd.f32 %v246_v41, %v2895_v40 }
 0x121   :  { %v374_v21 = vadd.f32 %v2775_v26, %v3405_v16 }
 0x122   :  { %v295_v53 = vcombine.low %v245_v23, %v247_v45  ;;  %v296_v63 = vcombine.high %v245_v23, %v247_v45 }
 0x123   :  { %v526_v23 = vcombine.high %v374_v21, %v374_v21 }
 0x124   :  { %v3015_v33 = vrot.slane %v296_v63, %v2770_v20 }
 0x125   :  { %v540_v41 = vrot.slane %v526_v23, %v2770_v20 }
 0x126   :  { %3404 = vst [vmem:[#allocation16_spill] sm:$0xff] %v3015_v33 }
 0x12a   :  { %v2528_v22 = vpop.eup %2527 }
 0x12b   :  { %v460_v5 = vmul.f32 %v2528_v22, %v455_v2  ;;  %v3009_v22 = vrot.slane %v295_v53, %v2770_v20  ;;  %v542_v53 = vcombine.high %v540_v41, %v540_v41 }
 0x12d   :  { %612 = vmatmul.mubr.f32.vlgmr.msra.gmra.mrb[4].mxu0 %v460_v5  ;;  %683 = vmatmul.mubr.f32.vlgmr.msra.gmra.mrb[4].mxu1 %v460_v5  ;;  %v168_v5 = vadd.f32 %v167_v17, %v2886_v32  ;;  %3402 = vst [vmem:[#allocation14_spill] sm:$0xff] %v3009_v22 }
 0x12e   :  { %2074 = vmatpush1.bf16.msra.mxu0 %v2781_v35  ;;  %2106 = vmatpush1.bf16.msra.mxu1 %v2784_v38 }
 0x12f   :  { %2076 = vmatprep.subr.bf16.mxu0 %v2789_v42  ;;  %2108 = vmatprep.subr.bf16.mxu1 %v2791_v46  ;;  %v293_v9 = vcombine.low %v168_v5, %v170_v29  ;;  %v294_v13 = vcombine.high %v168_v5, %v170_v29  ;;  %v533_v29 = vrot.slane %v374_v21, %v2770_v20 }
 0x130   :  { %792 = vmatprep.mubr.f32.mxu0 %v3400_v1  ;;  %863 = vmatprep.mubr.f32.mxu1 %v3400_v1 }
 0x131   :  { %v3006_v2 = vrot.slane %v293_v9, %v2770_v20  ;;  %v3012_v32 = vrot.slane %v294_v13, %v2770_v20  ;;  %v541_v13 = vcombine.high %v533_v29, %v533_v29 }
 0x132   :  { %2078 = vmatpush1.bf16.msra.mxu0 %v2793_v47  ;;  %2110 = vmatpush1.bf16.msra.mxu1 %v2796_v50 }
 0x133   :  { %2080 = vmatprep.subr.bf16.mxu0 %v2801_v54  ;;  %2112 = vmatprep.subr.bf16.mxu1 %v2803_v58  ;;  %3401 = vst [vmem:[#allocation13_spill] sm:$0xff] %v3006_v2  ;;  %3403 = vst [vmem:[#allocation15_spill] sm:$0xff] %v3012_v32 }
 0x136   :  { %2082 = vmatpush1.bf16.msra.mxu0 %v2805_v59  ;;  %2114 = vmatpush1.bf16.msra.mxu1 %v2808_v62 }
 0x137   :  { %2084 = vmatprep.subr.bf16.mxu0 %v2813_v3  ;;  %2116 = vmatprep.subr.bf16.mxu1 %v2815_v7 }
 0x13a   :  { %2086 = vmatpush1.bf16.msra.mxu0 %v2817_v8  ;;  %2118 = vmatpush1.bf16.msra.mxu1 %v2820_v12 }
 0x13b   :  { %2088 = vmatprep.subr.bf16.mxu0 %v2825_v19  ;;  %2120 = vmatprep.subr.bf16.mxu1 %v2827_v24 }
 0x13e   :  { %2090 = vmatpush1.bf16.msra.mxu0 %v2829_v25  ;;  %2122 = vmatpush1.bf16.msra.mxu1 %v2832_v31 }
 0x13f   :  { %2092 = vmatprep.subr.bf16.mxu0 %v2836_v37  ;;  %2124 = vmatprep.subr.bf16.mxu1 %v2838_v39 }
 0x142   :  { %2094 = vmatpush1.bf16.msra.mxu0 %v2841_v44  ;;  %2126 = vmatpush1.bf16.msra.mxu1 %v2845_v51 }
 0x143   :  { %2096 = vmatprep.subr.bf16.mxu0 %v2847_v52  ;;  %2128 = vmatprep.subr.bf16.mxu1 %v2849_v57 }
 0x146   :  { %2098 = vmatpush1.bf16.msra.mxu0 %v2852_v0  ;;  %2130 = vmatpush1.bf16.msra.mxu1 %v2859_v6 }
 0x147   :  { %2100 = vmatprep.subr.bf16.mxu0 %v2861_v10  ;;  %2132 = vmatprep.subr.bf16.mxu1 %v2865_v18 }
 0x14a   :  { %2102 = vmatpush1.bf16.msra.mxu0 %v2870_v27  ;;  %2134 = vmatpush1.bf16.msra.mxu1 %v2875_v28 }
 0x14b   :  { %2136 = vmatprep.subr.bf16.mxu0 %v2777_v30  ;;  %2168 = vmatprep.subr.bf16.mxu1 %v2779_v34 }
 0x200   :  { %v613_v45 = vpop.f32.mrb[4].mxu0  ;;  %v684_v9 = vpop.f32.mrb[4].mxu1 }
 0x201   :  { %v614_v63 = vadd.f32 %v613_v45, %v533_v29  ;;  %v685_v40 = vadd.f32 %v684_v9, %v540_v41  ;;  %v615_v17 = vpop.f32.mrb[5].mxu0  ;;  %v686_v36 = vpop.f32.mrb[5].mxu1 }
 0x202   :  { %v616_v22 = vadd.f32 %v615_v17, %v541_v13  ;;  %v687_v5 = vadd.f32 %v686_v36, %v542_v53 }
 0x203   :  { %2529 = vtanh.f32 %v614_v63 }
 0x204   :  { %2531 = vtanh.f32 %v685_v40 }
 0x205   :  { %2533 = vtanh.f32 %v616_v22 }
 0x206   :  { %2535 = vtanh.f32 %v687_v5 }
 0x20d   :  { %v2530_v4 = vpop.eup %2529 }
 0x20e   :  { %v2532_v11 = vpop.eup %2531  ;;  %v693_v16 = vmul.f32 %v2530_v4, %v2931_v43 }
 0x20f   :  { %v2534_v21 = vpop.eup %2533  ;;  %v695_v23 = vmul.f32 %v2532_v11, %v2934_v48 }
 0x210   :  { %v697_v33 = vadd.f32 %v693_v16, %v2941_v56  ;;  %v694_v32 = vmul.f32 %v2534_v21, %v2937_v49  ;;  %v2536_v41 = vpop.eup %2535 }
 0x211   :  { %v699_v29 = vadd.f32 %v695_v23, %v2944_v60  ;;  %v696_v45 = vmul.f32 %v2536_v41, %v2960_v14 }
 0x212   :  { %v698_v17 = vadd.f32 %v694_v32, %v2947_v61  ;;  %v3407_v32 = vld [vmem:[#allocation11_spill] sm:$0xff] }
 0x213   :  { %v702_v36 = vmul.f32 %v699_v29, %v697_v33  ;;  %v700_v9 = vadd.f32 %v696_v45, %v2963_v55 }
 0x214   :  { %v701_v40 = vmul.f32 %v698_v17, %v2956_v15  ;;  %v3406_v15 = vld [vmem:[#allocation10_spill] sm:$0xff] }
 0x215   :  { %v3408_v33 = vcombine.low %v3406_v15, %v3407_v32 }
 0x216   :  { %v3038_v22 = vadd.f32 %v702_v36, %v701_v40 }
 0x217   :  { %v375_v5 = vadd.f32 %v2775_v26, %v3408_v33 }
 0x218   :  { %2537 = vtanh.f32 %v3038_v22 }
 0x219   :  { %v707_v63 = vcombine.high %v375_v5, %v375_v5  ;;  %v714_v4 = vrot.slane %v375_v5, %v2770_v20 }
 0x21b   :  { %v721_v11 = vrot.slane %v707_v63, %v2770_v20  ;;  %v722_v23 = vcombine.high %v714_v4, %v714_v4 }
 0x21d   :  { %v723_v29 = vcombine.high %v721_v11, %v721_v11 }
 0x222   :  { %v2538_v13 = vpop.eup %2537 }
 0x223   :  { %v705_v53 = vmul.f32 %v2538_v13, %v700_v9 }
 0x225   :  { %793 = vmatmul.mubr.f32.vlgmr.msra.gmra.mrb[6].mxu0 %v705_v53  ;;  %864 = vmatmul.mubr.f32.vlgmr.msra.gmra.mrb[6].mxu1 %v705_v53 }
 0x226   :  { %2138 = vmatpush1.bf16.msra.mxu0 %v2781_v35  ;;  %2170 = vmatpush1.bf16.msra.mxu1 %v2784_v38 }
 0x227   :  { %2140 = vmatprep.subr.bf16.mxu0 %v2789_v42  ;;  %2172 = vmatprep.subr.bf16.mxu1 %v2791_v46 }
 0x228   :  { %973 = vmatprep.mubr.f32.mxu0 %v3400_v1  ;;  %1044 = vmatprep.mubr.f32.mxu1 %v3400_v1 }
 0x22a   :  { %2142 = vmatpush1.bf16.msra.mxu0 %v2793_v47  ;;  %2174 = vmatpush1.bf16.msra.mxu1 %v2796_v50 }
 0x22b   :  { %2144 = vmatprep.subr.bf16.mxu0 %v2801_v54  ;;  %2176 = vmatprep.subr.bf16.mxu1 %v2803_v58 }
 0x22e   :  { %2146 = vmatpush1.bf16.msra.mxu0 %v2805_v59  ;;  %2178 = vmatpush1.bf16.msra.mxu1 %v2808_v62 }
 0x22f   :  { %2148 = vmatprep.subr.bf16.mxu0 %v2813_v3  ;;  %2180 = vmatprep.subr.bf16.mxu1 %v2815_v7 }
 0x232   :  { %2150 = vmatpush1.bf16.msra.mxu0 %v2817_v8  ;;  %2182 = vmatpush1.bf16.msra.mxu1 %v2820_v12 }
 0x233   :  { %2152 = vmatprep.subr.bf16.mxu0 %v2825_v19  ;;  %2184 = vmatprep.subr.bf16.mxu1 %v2827_v24 }
 0x236   :  { %2154 = vmatpush1.bf16.msra.mxu0 %v2829_v25  ;;  %2186 = vmatpush1.bf16.msra.mxu1 %v2832_v31 }
 0x237   :  { %2156 = vmatprep.subr.bf16.mxu0 %v2836_v37  ;;  %2188 = vmatprep.subr.bf16.mxu1 %v2838_v39 }
 0x23a   :  { %2158 = vmatpush1.bf16.msra.mxu0 %v2841_v44  ;;  %2190 = vmatpush1.bf16.msra.mxu1 %v2845_v51 }
 0x23b   :  { %2160 = vmatprep.subr.bf16.mxu0 %v2847_v52  ;;  %2192 = vmatprep.subr.bf16.mxu1 %v2849_v57 }
 0x23e   :  { %2162 = vmatpush1.bf16.msra.mxu0 %v2852_v0  ;;  %2194 = vmatpush1.bf16.msra.mxu1 %v2859_v6 }
 0x23f   :  { %2164 = vmatprep.subr.bf16.mxu0 %v2861_v10  ;;  %2196 = vmatprep.subr.bf16.mxu1 %v2865_v18 }
 0x242   :  { %2166 = vmatpush1.bf16.msra.mxu0 %v2870_v27  ;;  %2198 = vmatpush1.bf16.msra.mxu1 %v2875_v28 }
 0x243   :  { %2200 = vmatprep.subr.bf16.mxu0 %v2777_v30  ;;  %2232 = vmatprep.subr.bf16.mxu1 %v2779_v34 }
 0x2f8   :  { %v794_v16 = vpop.f32.mrb[6].mxu0  ;;  %v865_v21 = vpop.f32.mrb[6].mxu1 }
 0x2f9   :  { %v795_v17 = vadd.f32 %v794_v16, %v714_v4  ;;  %v866_v36 = vadd.f32 %v865_v21, %v721_v11  ;;  %v796_v40 = vpop.f32.mrb[7].mxu0  ;;  %v867_v41 = vpop.f32.mrb[7].mxu1 }
 0x2fa   :  { %v797_v45 = vadd.f32 %v796_v40, %v722_v23  ;;  %v868_v9 = vadd.f32 %v867_v41, %v723_v29 }
 0x2fb   :  { %2539 = vtanh.f32 %v795_v17 }
 0x2fc   :  { %2541 = vtanh.f32 %v866_v36 }
 0x2fd   :  { %2543 = vtanh.f32 %v797_v45  ;;  %v3410_v45 = vld [vmem:[#allocation9_spill] sm:$0xff] }
 0x2fe   :  { %2545 = vtanh.f32 %v868_v9 }
 0x305   :  { %v2540_v13 = vpop.eup %2539 }
 0x306   :  { %v2542_v53 = vpop.eup %2541  ;;  %v874_v33 = vmul.f32 %v2540_v13, %v2931_v43 }
 0x307   :  { %v2544_v5 = vpop.eup %2543  ;;  %v876_v63 = vmul.f32 %v2542_v53, %v2934_v48 }
 0x308   :  { %v878_v2 = vadd.f32 %v874_v33, %v2941_v56  ;;  %v875_v20 = vmul.f32 %v2544_v5, %v2937_v49  ;;  %v2546_v29 = vpop.eup %2545 }
 0x309   :  { %v880_v4 = vadd.f32 %v876_v63, %v2944_v60  ;;  %v877_v17 = vmul.f32 %v2546_v29, %v2960_v14 }
 0x30a   :  { %v879_v11 = vadd.f32 %v875_v20, %v2947_v61  ;;  %v3409_v20 = vcombine.high %v3406_v15, %v3407_v32 }
 0x30b   :  { %v883_v16 = vmul.f32 %v880_v4, %v878_v2  ;;  %v881_v36 = vadd.f32 %v877_v17, %v2963_v55 }
 0x30c   :  { %v882_v21 = vmul.f32 %v879_v11, %v3038_v22  ;;  %v376_v2 = vadd.f32 %v2775_v26, %v3409_v20 }
 0x30e   :  { %v3090_v23 = vadd.f32 %v883_v16, %v882_v21  ;;  %v888_v22 = vcombine.high %v376_v2, %v376_v2  ;;  %v895_v9 = vrot.slane %v376_v2, %v3410_v45 }
 0x310   :  { %2547 = vtanh.f32 %v3090_v23  ;;  %v902_v13 = vrot.slane %v888_v22, %v3410_v45  ;;  %v903_v5 = vcombine.high %v895_v9, %v895_v9 }
 0x312   :  { %v904_v63 = vcombine.high %v902_v13, %v902_v13 }
 0x31a   :  { %v2548_v40 = vpop.eup %2547 }
 0x31b   :  { %v886_v41 = vmul.f32 %v2548_v40, %v881_v36 }
 0x31d   :  { %974 = vmatmul.mubr.f32.vlgmr.msra.gmra.mrb[8].mxu0 %v886_v41  ;;  %1045 = vmatmul.mubr.f32.vlgmr.msra.gmra.mrb[8].mxu1 %v886_v41 }
 0x31e   :  { %2202 = vmatpush1.bf16.msra.mxu0 %v2781_v35  ;;  %2234 = vmatpush1.bf16.msra.mxu1 %v2784_v38 }
 0x31f   :  { %2204 = vmatprep.subr.bf16.mxu0 %v2789_v42  ;;  %2236 = vmatprep.subr.bf16.mxu1 %v2791_v46 }
 0x320   :  { %1154 = vmatprep.mubr.f32.mxu0 %v3400_v1  ;;  %1225 = vmatprep.mubr.f32.mxu1 %v3400_v1 }
 0x322   :  { %2206 = vmatpush1.bf16.msra.mxu0 %v2793_v47  ;;  %2238 = vmatpush1.bf16.msra.mxu1 %v2796_v50 }
 0x323   :  { %2208 = vmatprep.subr.bf16.mxu0 %v2801_v54  ;;  %2240 = vmatprep.subr.bf16.mxu1 %v2803_v58 }
 0x326   :  { %2210 = vmatpush1.bf16.msra.mxu0 %v2805_v59  ;;  %2242 = vmatpush1.bf16.msra.mxu1 %v2808_v62 }
 0x327   :  { %2212 = vmatprep.subr.bf16.mxu0 %v2813_v3  ;;  %2244 = vmatprep.subr.bf16.mxu1 %v2815_v7 }
 0x32a   :  { %2214 = vmatpush1.bf16.msra.mxu0 %v2817_v8  ;;  %2246 = vmatpush1.bf16.msra.mxu1 %v2820_v12 }
 0x32b   :  { %2216 = vmatprep.subr.bf16.mxu0 %v2825_v19  ;;  %2248 = vmatprep.subr.bf16.mxu1 %v2827_v24 }
 0x32e   :  { %2218 = vmatpush1.bf16.msra.mxu0 %v2829_v25  ;;  %2250 = vmatpush1.bf16.msra.mxu1 %v2832_v31 }
 0x32f   :  { %2220 = vmatprep.subr.bf16.mxu0 %v2836_v37  ;;  %2252 = vmatprep.subr.bf16.mxu1 %v2838_v39 }
 0x332   :  { %2222 = vmatpush1.bf16.msra.mxu0 %v2841_v44  ;;  %2254 = vmatpush1.bf16.msra.mxu1 %v2845_v51 }
 0x333   :  { %2224 = vmatprep.subr.bf16.mxu0 %v2847_v52  ;;  %2256 = vmatprep.subr.bf16.mxu1 %v2849_v57 }
 0x336   :  { %2226 = vmatpush1.bf16.msra.mxu0 %v2852_v0  ;;  %2258 = vmatpush1.bf16.msra.mxu1 %v2859_v6 }
 0x337   :  { %2228 = vmatprep.subr.bf16.mxu0 %v2861_v10  ;;  %2260 = vmatprep.subr.bf16.mxu1 %v2865_v18 }
 0x33a   :  { %2230 = vmatpush1.bf16.msra.mxu0 %v2870_v27  ;;  %2262 = vmatpush1.bf16.msra.mxu1 %v2875_v28 }
 0x33b   :  { %2264 = vmatprep.subr.bf16.mxu0 %v2777_v30  ;;  %2296 = vmatprep.subr.bf16.mxu1 %v2779_v34 }
 0x3f0   :  { %v975_v53 = vpop.f32.mrb[8].mxu0  ;;  %v1046_v33 = vpop.f32.mrb[8].mxu1 }
 0x3f1   :  { %v976_v4 = vadd.f32 %v975_v53, %v895_v9  ;;  %v1047_v11 = vadd.f32 %v1046_v33, %v902_v13  ;;  %v977_v16 = vpop.f32.mrb[9].mxu0  ;;  %v1048_v21 = vpop.f32.mrb[9].mxu1 }
 0x3f2   :  { %v978_v29 = vadd.f32 %v977_v16, %v903_v5  ;;  %v1049_v17 = vadd.f32 %v1048_v21, %v904_v63  ;;  %v3412_v21 = vld [vmem:[#allocation14_spill] sm:$0xff] }
 0x3f3   :  { %2549 = vtanh.f32 %v976_v4 }
 0x3f4   :  { %2551 = vtanh.f32 %v1047_v11 }
 0x3f5   :  { %2553 = vtanh.f32 %v978_v29 }
 0x3f6   :  { %2555 = vtanh.f32 %v1049_v17 }
 0x3fd   :  { %v2550_v15 = vpop.eup %2549 }
 0x3fe   :  { %v2552_v32 = vpop.eup %2551  ;;  %v1055_v36 = vmul.f32 %v2550_v15, %v2931_v43 }
 0x3ff   :  { %v2554_v40 = vpop.eup %2553  ;;  %v1057_v41 = vmul.f32 %v2552_v32, %v2934_v48 }
 0x400   :  { %v1059_v20 = vadd.f32 %v1055_v36, %v2941_v56  ;;  %v1056_v2 = vmul.f32 %v2554_v40, %v2937_v49  ;;  %v2556_v5 = vpop.eup %2555 }
 0x401   :  { %v1061_v22 = vadd.f32 %v1057_v41, %v2944_v60  ;;  %v1058_v63 = vmul.f32 %v2556_v5, %v2960_v14 }
 0x402   :  { %v1060_v9 = vadd.f32 %v1056_v2, %v2947_v61 }
 0x403   :  { %v1064_v13 = vmul.f32 %v1061_v22, %v1059_v20  ;;  %v1062_v4 = vadd.f32 %v1058_v63, %v2963_v55 }
 0x404   :  { %v1063_v53 = vmul.f32 %v1060_v9, %v3090_v23  ;;  %v3411_v23 = vld [vmem:[#allocation13_spill] sm:$0xff] }
 0x405   :  { %v3413_v29 = vcombine.low %v3411_v23, %v3412_v21 }
 0x406   :  { %v3142_v33 = vadd.f32 %v1064_v13, %v1063_v53 }
 0x407   :  { %v377_v17 = vadd.f32 %v2775_v26, %v3413_v29 }
 0x408   :  { %2557 = vtanh.f32 %v3142_v33 }
 0x409   :  { %v1069_v15 = vcombine.high %v377_v17, %v377_v17  ;;  %v1076_v32 = vrot.slane %v377_v17, %v3410_v45 }
 0x40b   :  { %v1083_v36 = vrot.slane %v1069_v15, %v3410_v45  ;;  %v1084_v20 = vcombine.high %v1076_v32, %v1076_v32 }
 0x40d   :  { %v1085_v2 = vcombine.high %v1083_v36, %v1083_v36 }
 0x412   :  { %v2558_v11 = vpop.eup %2557 }
 0x413   :  { %v1067_v16 = vmul.f32 %v2558_v11, %v1062_v4 }
 0x415   :  { %1155 = vmatmul.mubr.f32.vlgmr.msra.gmra.mrb[10].mxu0 %v1067_v16  ;;  %1226 = vmatmul.mubr.f32.vlgmr.msra.gmra.mrb[10].mxu1 %v1067_v16 }
 0x416   :  { %2266 = vmatpush1.bf16.msra.mxu0 %v2781_v35  ;;  %2298 = vmatpush1.bf16.msra.mxu1 %v2784_v38 }
 0x417   :  { %2268 = vmatprep.subr.bf16.mxu0 %v2789_v42  ;;  %2300 = vmatprep.subr.bf16.mxu1 %v2791_v46 }
 0x418   :  { %1335 = vmatprep.mubr.f32.mxu0 %v3400_v1  ;;  %1406 = vmatprep.mubr.f32.mxu1 %v3400_v1 }
 0x41a   :  { %2270 = vmatpush1.bf16.msra.mxu0 %v2793_v47  ;;  %2302 = vmatpush1.bf16.msra.mxu1 %v2796_v50 }
 0x41b   :  { %2272 = vmatprep.subr.bf16.mxu0 %v2801_v54  ;;  %2304 = vmatprep.subr.bf16.mxu1 %v2803_v58 }
 0x41e   :  { %2274 = vmatpush1.bf16.msra.mxu0 %v2805_v59  ;;  %2306 = vmatpush1.bf16.msra.mxu1 %v2808_v62 }
 0x41f   :  { %2276 = vmatprep.subr.bf16.mxu0 %v2813_v3  ;;  %2308 = vmatprep.subr.bf16.mxu1 %v2815_v7 }
 0x422   :  { %2278 = vmatpush1.bf16.msra.mxu0 %v2817_v8  ;;  %2310 = vmatpush1.bf16.msra.mxu1 %v2820_v12 }
 0x423   :  { %2280 = vmatprep.subr.bf16.mxu0 %v2825_v19  ;;  %2312 = vmatprep.subr.bf16.mxu1 %v2827_v24 }
 0x426   :  { %2282 = vmatpush1.bf16.msra.mxu0 %v2829_v25  ;;  %2314 = vmatpush1.bf16.msra.mxu1 %v2832_v31 }
 0x427   :  { %2284 = vmatprep.subr.bf16.mxu0 %v2836_v37  ;;  %2316 = vmatprep.subr.bf16.mxu1 %v2838_v39 }
 0x42a   :  { %2286 = vmatpush1.bf16.msra.mxu0 %v2841_v44  ;;  %2318 = vmatpush1.bf16.msra.mxu1 %v2845_v51 }
 0x42b   :  { %2288 = vmatprep.subr.bf16.mxu0 %v2847_v52  ;;  %2320 = vmatprep.subr.bf16.mxu1 %v2849_v57 }
 0x42e   :  { %2290 = vmatpush1.bf16.msra.mxu0 %v2852_v0  ;;  %2322 = vmatpush1.bf16.msra.mxu1 %v2859_v6 }
 0x42f   :  { %2292 = vmatprep.subr.bf16.mxu0 %v2861_v10  ;;  %2324 = vmatprep.subr.bf16.mxu1 %v2865_v18 }
 0x432   :  { %2294 = vmatpush1.bf16.msra.mxu0 %v2870_v27  ;;  %2326 = vmatpush1.bf16.msra.mxu1 %v2875_v28 }
 0x433   :  { %2328 = vmatprep.subr.bf16.mxu0 %v2777_v30  ;;  %2360 = vmatprep.subr.bf16.mxu1 %v2779_v34 }
 0x4e8   :  { %v1156_v40 = vpop.f32.mrb[10].mxu0  ;;  %v1227_v41 = vpop.f32.mrb[10].mxu1 }
 0x4e9   :  { %v1157_v22 = vadd.f32 %v1156_v40, %v1076_v32  ;;  %v1228_v9 = vadd.f32 %v1227_v41, %v1083_v36  ;;  %v1158_v13 = vpop.f32.mrb[11].mxu0  ;;  %v1229_v53 = vpop.f32.mrb[11].mxu1 }
 0x4ea   :  { %v1159_v5 = vadd.f32 %v1158_v13, %v1084_v20  ;;  %v1230_v63 = vadd.f32 %v1229_v53, %v1085_v2 }
 0x4eb   :  { %2559 = vtanh.f32 %v1157_v22 }
 0x4ec   :  { %2561 = vtanh.f32 %v1228_v9 }
 0x4ed   :  { %2563 = vtanh.f32 %v1159_v5 }
 0x4ee   :  { %2565 = vtanh.f32 %v1230_v63  ;;  %v3415_v63 = vld [vmem:[#allocation9_spill] sm:$0xff] }
 0x4f5   :  { %v2560_v4 = vpop.eup %2559 }
 0x4f6   :  { %v2562_v11 = vpop.eup %2561  ;;  %v1236_v16 = vmul.f32 %v2560_v4, %v2931_v43 }
 0x4f7   :  { %v2564_v29 = vpop.eup %2563  ;;  %v1238_v17 = vmul.f32 %v2562_v11, %v2934_v48 }
 0x4f8   :  { %v1240_v15 = vadd.f32 %v1236_v16, %v2941_v56  ;;  %v1237_v45 = vmul.f32 %v2564_v29, %v2937_v49  ;;  %v2566_v2 = vpop.eup %2565 }
 0x4f9   :  { %v1242_v32 = vadd.f32 %v1238_v17, %v2944_v60  ;;  %v1239_v22 = vmul.f32 %v2566_v2, %v2960_v14 }
 0x4fa   :  { %v1241_v36 = vadd.f32 %v1237_v45, %v2947_v61  ;;  %v3414_v45 = vcombine.high %v3411_v23, %v3412_v21 }
 0x4fb   :  { %v1245_v40 = vmul.f32 %v1242_v32, %v1240_v15  ;;  %v1243_v9 = vadd.f32 %v1239_v22, %v2963_v55 }
 0x4fc   :  { %v1244_v41 = vmul.f32 %v1241_v36, %v3142_v33  ;;  %v378_v33 = vadd.f32 %v2775_v26, %v3414_v45 }
 0x4fe   :  { %v3194_v20 = vadd.f32 %v1245_v40, %v1244_v41  ;;  %v1250_v5 = vcombine.high %v378_v33, %v378_v33  ;;  %v1257_v4 = vrot.slane %v378_v33, %v3415_v63 }
 0x500   :  { %2567 = vtanh.f32 %v3194_v20  ;;  %v1264_v11 = vrot.slane %v1250_v5, %v3415_v63  ;;  %v1265_v17 = vcombine.high %v1257_v4, %v1257_v4 }
 0x502   :  { %v1266_v15 = vcombine.high %v1264_v11, %v1264_v11 }
 0x50a   :  { %v2568_v13 = vpop.eup %2567 }
 0x50b   :  { %v1248_v53 = vmul.f32 %v2568_v13, %v1243_v9 }
 0x50d   :  { %1336 = vmatmul.mubr.f32.vlgmr.msra.gmra.mrb[12].mxu0 %v1248_v53  ;;  %1407 = vmatmul.mubr.f32.vlgmr.msra.gmra.mrb[12].mxu1 %v1248_v53 }
 0x50e   :  { %2330 = vmatpush1.bf16.msra.mxu0 %v2781_v35  ;;  %2362 = vmatpush1.bf16.msra.mxu1 %v2784_v38 }
 0x50f   :  { %2332 = vmatprep.subr.bf16.mxu0 %v2789_v42  ;;  %2364 = vmatprep.subr.bf16.mxu1 %v2791_v46 }
 0x510   :  { %1516 = vmatprep.mubr.f32.mxu0 %v3400_v1  ;;  %1587 = vmatprep.mubr.f32.mxu1 %v3400_v1 }
 0x512   :  { %2334 = vmatpush1.bf16.msra.mxu0 %v2793_v47  ;;  %2366 = vmatpush1.bf16.msra.mxu1 %v2796_v50 }
 0x513   :  { %2336 = vmatprep.subr.bf16.mxu0 %v2801_v54  ;;  %2368 = vmatprep.subr.bf16.mxu1 %v2803_v58 }
 0x516   :  { %2338 = vmatpush1.bf16.msra.mxu0 %v2805_v59  ;;  %2370 = vmatpush1.bf16.msra.mxu1 %v2808_v62 }
 0x517   :  { %2340 = vmatprep.subr.bf16.mxu0 %v2813_v3  ;;  %2372 = vmatprep.subr.bf16.mxu1 %v2815_v7 }
 0x51a   :  { %2342 = vmatpush1.bf16.msra.mxu0 %v2817_v8  ;;  %2374 = vmatpush1.bf16.msra.mxu1 %v2820_v12 }
 0x51b   :  { %2344 = vmatprep.subr.bf16.mxu0 %v2825_v19  ;;  %2376 = vmatprep.subr.bf16.mxu1 %v2827_v24 }
 0x51e   :  { %2346 = vmatpush1.bf16.msra.mxu0 %v2829_v25  ;;  %2378 = vmatpush1.bf16.msra.mxu1 %v2832_v31 }
 0x51f   :  { %2348 = vmatprep.subr.bf16.mxu0 %v2836_v37  ;;  %2380 = vmatprep.subr.bf16.mxu1 %v2838_v39 }
 0x522   :  { %2350 = vmatpush1.bf16.msra.mxu0 %v2841_v44  ;;  %2382 = vmatpush1.bf16.msra.mxu1 %v2845_v51 }
 0x523   :  { %2352 = vmatprep.subr.bf16.mxu0 %v2847_v52  ;;  %2384 = vmatprep.subr.bf16.mxu1 %v2849_v57 }
 0x526   :  { %2354 = vmatpush1.bf16.msra.mxu0 %v2852_v0  ;;  %2386 = vmatpush1.bf16.msra.mxu1 %v2859_v6 }
 0x527   :  { %2356 = vmatprep.subr.bf16.mxu0 %v2861_v10  ;;  %2388 = vmatprep.subr.bf16.mxu1 %v2865_v18 }
 0x52a   :  { %2358 = vmatpush1.bf16.msra.mxu0 %v2870_v27  ;;  %2390 = vmatpush1.bf16.msra.mxu1 %v2875_v28 }
 0x52b   :  { %2392 = vmatprep.subr.bf16.mxu0 %v2777_v30  ;;  %2424 = vmatprep.subr.bf16.mxu1 %v2779_v34 }
 0x5e0   :  { %v1337_v16 = vpop.f32.mrb[12].mxu0  ;;  %v1408_v29 = vpop.f32.mrb[12].mxu1 }
 0x5e1   :  { %v1338_v32 = vadd.f32 %v1337_v16, %v1257_v4  ;;  %v1409_v36 = vadd.f32 %v1408_v29, %v1264_v11  ;;  %v1339_v40 = vpop.f32.mrb[13].mxu0  ;;  %v1410_v41 = vpop.f32.mrb[13].mxu1 }
 0x5e2   :  { %v1340_v2 = vadd.f32 %v1339_v40, %v1265_v17  ;;  %v1411_v22 = vadd.f32 %v1410_v41, %v1266_v15  ;;  %v3417_v41 = vld [vmem:[#allocation16_spill] sm:$0xff] }
 0x5e3   :  { %2569 = vtanh.f32 %v1338_v32 }
 0x5e4   :  { %2571 = vtanh.f32 %v1409_v36 }
 0x5e5   :  { %2573 = vtanh.f32 %v1340_v2 }
 0x5e6   :  { %2575 = vtanh.f32 %v1411_v22 }
 0x5ed   :  { %v2570_v23 = vpop.eup %2569 }
 0x5ee   :  { %v2572_v21 = vpop.eup %2571  ;;  %v1417_v9 = vmul.f32 %v2570_v23, %v2931_v43 }
 0x5ef   :  { %v2574_v13 = vpop.eup %2573  ;;  %v1419_v53 = vmul.f32 %v2572_v21, %v2934_v48 }
 0x5f0   :  { %v1421_v45 = vadd.f32 %v1417_v9, %v2941_v56  ;;  %v1418_v33 = vmul.f32 %v2574_v13, %v2937_v49  ;;  %v2576_v17 = vpop.eup %2575 }
 0x5f1   :  { %v1423_v5 = vadd.f32 %v1419_v53, %v2944_v60  ;;  %v1420_v15 = vmul.f32 %v2576_v17, %v2960_v14 }
 0x5f2   :  { %v1422_v4 = vadd.f32 %v1418_v33, %v2947_v61 }
 0x5f3   :  { %v1426_v11 = vmul.f32 %v1423_v5, %v1421_v45  ;;  %v1424_v32 = vadd.f32 %v1420_v15, %v2963_v55 }
 0x5f4   :  { %v1425_v16 = vmul.f32 %v1422_v4, %v3194_v20  ;;  %v3416_v20 = vld [vmem:[#allocation15_spill] sm:$0xff] }
 0x5f5   :  { %v3418_v2 = vcombine.low %v3416_v20, %v3417_v41 }
 0x5f6   :  { %v3246_v29 = vadd.f32 %v1426_v11, %v1425_v16 }
 0x5f7   :  { %v379_v22 = vadd.f32 %v2775_v26, %v3418_v2 }
 0x5f8   :  { %2577 = vtanh.f32 %v3246_v29 }
 0x5f9   :  { %v1431_v23 = vcombine.high %v379_v22, %v379_v22  ;;  %v1438_v21 = vrot.slane %v379_v22, %v3415_v63 }
 0x5fb   :  { %v1445_v9 = vrot.slane %v1431_v23, %v3415_v63  ;;  %v1446_v45 = vcombine.high %v1438_v21, %v1438_v21 }
 0x5fd   :  { %v1447_v33 = vcombine.high %v1445_v9, %v1445_v9 }
 0x602   :  { %v2578_v36 = vpop.eup %2577 }
 0x603   :  { %v1429_v40 = vmul.f32 %v2578_v36, %v1424_v32 }
 0x605   :  { %1517 = vmatmul.mubr.f32.vlgmr.msra.gmra.mrb[14].mxu0 %v1429_v40  ;;  %1588 = vmatmul.mubr.f32.vlgmr.msra.gmra.mrb[14].mxu1 %v1429_v40 }
 0x606   :  { %2394 = vmatpush1.bf16.msra.mxu0 %v2781_v35  ;;  %2426 = vmatpush1.bf16.msra.mxu1 %v2784_v38 }
 0x607   :  { %2396 = vmatprep.subr.bf16.mxu0 %v2789_v42  ;;  %2428 = vmatprep.subr.bf16.mxu1 %v2791_v46 }
 0x608   :  { %1697 = vmatprep.mubr.f32.mxu0 %v3400_v1  ;;  %1768 = vmatprep.mubr.f32.mxu1 %v3400_v1 }
 0x60a   :  { %2398 = vmatpush1.bf16.msra.mxu0 %v2793_v47  ;;  %2430 = vmatpush1.bf16.msra.mxu1 %v2796_v50 }
 0x60b   :  { %2400 = vmatprep.subr.bf16.mxu0 %v2801_v54  ;;  %2432 = vmatprep.subr.bf16.mxu1 %v2803_v58 }
 0x60e   :  { %2402 = vmatpush1.bf16.msra.mxu0 %v2805_v59  ;;  %2434 = vmatpush1.bf16.msra.mxu1 %v2808_v62 }
 0x60f   :  { %2404 = vmatprep.subr.bf16.mxu0 %v2813_v3  ;;  %2436 = vmatprep.subr.bf16.mxu1 %v2815_v7 }
 0x612   :  { %2406 = vmatpush1.bf16.msra.mxu0 %v2817_v8  ;;  %2438 = vmatpush1.bf16.msra.mxu1 %v2820_v12 }
 0x613   :  { %2408 = vmatprep.subr.bf16.mxu0 %v2825_v19  ;;  %2440 = vmatprep.subr.bf16.mxu1 %v2827_v24 }
 0x616   :  { %2410 = vmatpush1.bf16.msra.mxu0 %v2829_v25  ;;  %2442 = vmatpush1.bf16.msra.mxu1 %v2832_v31 }
 0x617   :  { %2412 = vmatprep.subr.bf16.mxu0 %v2836_v37  ;;  %2444 = vmatprep.subr.bf16.mxu1 %v2838_v39 }
 0x61a   :  { %2414 = vmatpush1.bf16.msra.mxu0 %v2841_v44  ;;  %2446 = vmatpush1.bf16.msra.mxu1 %v2845_v51 }
 0x61b   :  { %2416 = vmatprep.subr.bf16.mxu0 %v2847_v52  ;;  %2448 = vmatprep.subr.bf16.mxu1 %v2849_v57 }
 0x61e   :  { %2418 = vmatpush1.bf16.msra.mxu0 %v2852_v0  ;;  %2450 = vmatpush1.bf16.msra.mxu1 %v2859_v6 }
 0x61f   :  { %2420 = vmatprep.subr.bf16.mxu0 %v2861_v10  ;;  %2452 = vmatprep.subr.bf16.mxu1 %v2865_v18 }
 0x622   :  { %2422 = vmatpush1.bf16.msra.mxu0 %v2870_v27  ;;  %2454 = vmatpush1.bf16.msra.mxu1 %v2875_v28 }
 0x623   :  { %2456 = vmatprep.subr.bf16.mxu0 %v2777_v30  ;;  %2488 = vmatprep.subr.bf16.mxu1 %v2779_v34 }
 0x6d8   :  { %v1518_v13 = vpop.f32.mrb[14].mxu0  ;;  %v1589_v53 = vpop.f32.mrb[14].mxu1 }
 0x6d9   :  { %v1519_v5 = vadd.f32 %v1518_v13, %v1438_v21  ;;  %v1590_v4 = vadd.f32 %v1589_v53, %v1445_v9  ;;  %v1520_v11 = vpop.f32.mrb[15].mxu0  ;;  %v1591_v30 = vpop.f32.mrb[15].mxu1 }
 0x6da   :  { %v1521_v16 = vadd.f32 %v1520_v11, %v1446_v45  ;;  %v1592_v34 = vadd.f32 %v1591_v30, %v1447_v33 }
 0x6db   :  { %2579 = vtanh.f32 %v1519_v5 }
 0x6dc   :  { %2581 = vtanh.f32 %v1590_v4 }
 0x6dd   :  { %2583 = vtanh.f32 %v1521_v16 }
 0x6de   :  { %2585 = vtanh.f32 %v1592_v34 }
 0x6e5   :  { %v2580_v17 = vpop.eup %2579 }
 0x6e6   :  { %v2582_v15 = vpop.eup %2581  ;;  %v1598_v32 = vmul.f32 %v2580_v17, %v2931_v43 }
 0x6e7   :  { %v2584_v36 = vpop.eup %2583  ;;  %v1600_v40 = vmul.f32 %v2582_v15, %v2934_v48 }
 0x6e8   :  { %v1602_v2 = vadd.f32 %v1598_v32, %v2941_v56  ;;  %v1599_v22 = vmul.f32 %v2584_v36, %v2937_v49  ;;  %v2586_v45 = vpop.eup %2585 }
 0x6e9   :  { %v1604_v23 = vadd.f32 %v1600_v40, %v2944_v60  ;;  %v1601_v33 = vmul.f32 %v2586_v45, %v2960_v14 }
 0x6ea   :  { %v1603_v21 = vadd.f32 %v1599_v22, %v2947_v61 }
 0x6eb   :  { %v1607_v9 = vmul.f32 %v1604_v23, %v1602_v2  ;;  %v1605_v5 = vadd.f32 %v1601_v33, %v2963_v55 }
 0x6ec   :  { %v1606_v13 = vmul.f32 %v1603_v21, %v3246_v29 }
 0x6ee   :  { %v3298_v53 = vadd.f32 %v1607_v9, %v1606_v13 }
 0x6f0   :  { %2587 = vtanh.f32 %v3298_v53 }
 0x6fa   :  { %v2588_v4 = vpop.eup %2587 }
 0x6fb   :  { %v1610_v11 = vmul.f32 %v2588_v4, %v1605_v5 }
 0x6fd   :  { %1698 = vmatmul.mubr.f32.vlgmr.msra.gmra.mrb[16].mxu0 %v1610_v11  ;;  %1769 = vmatmul.mubr.f32.vlgmr.msra.gmra.mrb[16].mxu1 %v1610_v11 }
 0x6fe   :  { %2458 = vmatpush1.bf16.msra.mxu0 %v2781_v35  ;;  %2490 = vmatpush1.bf16.msra.mxu1 %v2784_v38  ;;  %v3419_v35 = vcombine.high %v3416_v20, %v3417_v41  ;;  %v3420_v20 = vld [vmem:[#allocation12_spill] sm:$0xff] }
 0x6ff   :  { %2460 = vmatprep.subr.bf16.mxu0 %v2789_v42  ;;  %2492 = vmatprep.subr.bf16.mxu1 %v2791_v46  ;;  %v373_v41 = vadd.f32 %v2775_v26, %v3420_v20 }
 0x700   :  { %1878 = vmatprep.mubr.f32.mxu0 %v3400_v1  ;;  %1949 = vmatprep.mubr.f32.mxu1 %v3400_v1  ;;  %v380_v38 = vadd.f32 %v2775_v26, %v3419_v35 }
 0x701   :  { %v1793_v30 = vcombine.high %v373_v41, %v373_v41  ;;  %v1800_v16 = vrot.slane %v373_v41, %v3415_v63 }
 0x702   :  { %2462 = vmatpush1.bf16.msra.mxu0 %v2793_v47  ;;  %2494 = vmatpush1.bf16.msra.mxu1 %v2796_v50  ;;  %v1612_v42 = vcombine.high %v380_v38, %v380_v38  ;;  %v1619_v46 = vrot.slane %v380_v38, %v3415_v63 }
 0x703   :  { %2464 = vmatprep.subr.bf16.mxu0 %v2801_v54  ;;  %2496 = vmatprep.subr.bf16.mxu1 %v2803_v58  ;;  %v1807_v34 = vrot.slane %v1793_v30, %v3415_v63  ;;  %v1808_v32 = vcombine.high %v1800_v16, %v1800_v16 }
 0x704   :  { %v1626_v47 = vrot.slane %v1612_v42, %v3415_v63  ;;  %v1627_v58 = vcombine.high %v1619_v46, %v1619_v46 }
 0x705   :  { %v1809_v36 = vcombine.high %v1807_v34, %v1807_v34 }
 0x706   :  { %2466 = vmatpush1.bf16.msra.mxu0 %v2805_v59  ;;  %2498 = vmatpush1.bf16.msra.mxu1 %v2808_v62  ;;  %v1628_v59 = vcombine.high %v1626_v47, %v1626_v47 }
 0x707   :  { %2468 = vmatprep.subr.bf16.mxu0 %v2813_v3  ;;  %2500 = vmatprep.subr.bf16.mxu1 %v2815_v7 }
 0x70a   :  { %2470 = vmatpush1.bf16.msra.mxu0 %v2817_v8  ;;  %2502 = vmatpush1.bf16.msra.mxu1 %v2820_v12 }
 0x70b   :  { %2472 = vmatprep.subr.bf16.mxu0 %v2825_v19  ;;  %2504 = vmatprep.subr.bf16.mxu1 %v2827_v24 }
 0x70e   :  { %2474 = vmatpush1.bf16.msra.mxu0 %v2829_v25  ;;  %2506 = vmatpush1.bf16.msra.mxu1 %v2832_v31 }
 0x70f   :  { %2476 = vmatprep.subr.bf16.mxu0 %v2836_v37  ;;  %2508 = vmatprep.subr.bf16.mxu1 %v2838_v39 }
 0x712   :  { %2478 = vmatpush1.bf16.msra.mxu0 %v2841_v44  ;;  %2510 = vmatpush1.bf16.msra.mxu1 %v2845_v51 }
 0x713   :  { %2480 = vmatprep.subr.bf16.mxu0 %v2847_v52  ;;  %2512 = vmatprep.subr.bf16.mxu1 %v2849_v57 }
 0x716   :  { %2482 = vmatpush1.bf16.msra.mxu0 %v2852_v0  ;;  %2514 = vmatpush1.bf16.msra.mxu1 %v2859_v6 }
 0x717   :  { %2484 = vmatprep.subr.bf16.mxu0 %v2861_v10  ;;  %2516 = vmatprep.subr.bf16.mxu1 %v2865_v18 }
 0x71a   :  { %2486 = vmatpush1.bf16.msra.mxu0 %v2870_v27  ;;  %2518 = vmatpush1.bf16.msra.mxu1 %v2875_v28 }
 0x7d0   :  { %v1699_v50 = vpop.f32.mrb[16].mxu0  ;;  %v1770_v54 = vpop.f32.mrb[16].mxu1 }
 0x7d1   :  { %v1700_v62 = vadd.f32 %v1699_v50, %v1619_v46  ;;  %v1771_v3 = vadd.f32 %v1770_v54, %v1626_v47  ;;  %v1701_v7 = vpop.f32.mrb[17].mxu0  ;;  %v1772_v8 = vpop.f32.mrb[17].mxu1 }
 0x7d2   :  { %v1702_v12 = vadd.f32 %v1701_v7, %v1627_v58  ;;  %v1773_v19 = vadd.f32 %v1772_v8, %v1628_v59 }
 0x7d3   :  { %2589 = vtanh.f32 %v1700_v62 }
 0x7d4   :  { %2591 = vtanh.f32 %v1771_v3 }
 0x7d5   :  { %2593 = vtanh.f32 %v1702_v12 }
 0x7d6   :  { %2595 = vtanh.f32 %v1773_v19 }
 0x7dd   :  { %v2590_v24 = vpop.eup %2589 }
 0x7de   :  { %v2592_v25 = vpop.eup %2591  ;;  %v1779_v31 = vmul.f32 %v2590_v24, %v2931_v43 }
 0x7df   :  { %v2594_v37 = vpop.eup %2593  ;;  %v1781_v39 = vmul.f32 %v2592_v25, %v2934_v48 }
 0x7e0   :  { %v1783_v44 = vadd.f32 %v1779_v31, %v2941_v56  ;;  %v1780_v51 = vmul.f32 %v2594_v37, %v2937_v49  ;;  %v2596_v18 = vpop.eup %2595 }
 0x7e1   :  { %v1785_v52 = vadd.f32 %v1781_v39, %v2944_v60  ;;  %v1782_v27 = vmul.f32 %v2596_v18, %v2960_v14 }
 0x7e2   :  { %v1784_v57 = vadd.f32 %v1780_v51, %v2947_v61 }
 0x7e3   :  { %v1788_v0 = vmul.f32 %v1785_v52, %v1783_v44  ;;  %v1786_v28 = vadd.f32 %v1782_v27, %v2963_v55 }
 0x7e4   :  { %v1787_v6 = vmul.f32 %v1784_v57, %v3298_v53 }
 0x7e6   :  { %v1789_v10 = vadd.f32 %v1788_v0, %v1787_v6 }
 0x7e8   :  { %2597 = vtanh.f32 %v1789_v10 }
 0x7f2   :  { %v2598_v1 = vpop.eup %2597 }
 0x7f3   :  { %v1791_v29 = vmul.f32 %v2598_v1, %v1786_v28 }
 0x7f5   :  { %1879 = vmatmul.mubr.f32.vlgmr.msra.gmra.mrb[18].mxu0 %v1791_v29  ;;  %1950 = vmatmul.mubr.f32.vlgmr.msra.gmra.mrb[18].mxu1 %v1791_v29 }
 0x8c8   :  { %v1880_v17 = vpop.f32.mrb[18].mxu0  ;;  %v1951_v15 = vpop.f32.mrb[18].mxu1 }
 0x8c9   :  { %v1881_v40 = vadd.f32 %v1880_v17, %v1800_v16  ;;  %v1952_v2 = vadd.f32 %v1951_v15, %v1807_v34  ;;  %v1882_v22 = vpop.f32.mrb[19].mxu0  ;;  %v1953_v23 = vpop.f32.mrb[19].mxu1 }
 0x8ca   :  { %v1883_v21 = vadd.f32 %v1882_v22, %v1808_v32  ;;  %v1954_v9 = vadd.f32 %v1953_v23, %v1809_v36 }
 0x8cb   :  { %2599 = vtanh.f32 %v1881_v40 }
 0x8cc   :  { %2601 = vtanh.f32 %v1952_v2 }
 0x8cd   :  { %2603 = vtanh.f32 %v1883_v21 }
 0x8ce   :  { %2605 = vtanh.f32 %v1954_v9 }
 0x8d5   :  { %v2600_v13 = vpop.eup %2599 }
 0x8d6   :  { %v2602_v26 = vpop.eup %2601  ;;  %v1960_v53 = vmul.f32 %v2600_v13, %v2931_v43 }
 0x8d7   :  { %v2604_v45 = vpop.eup %2603  ;;  %v1962_v63 = vmul.f32 %v2602_v26, %v2934_v48  ;;  %v2005_v48 = vld [vmem:[%s3375_s7] ss:$0 sm:$0xff] }
 0x8d8   :  { %v1964_v33 = vadd.f32 %v1960_v53, %v2941_v56  ;;  %v1961_v5 = vmul.f32 %v2604_v45, %v2937_v49  ;;  %v2606_v46 = vpop.eup %2605 }
 0x8d9   :  { %v1966_v4 = vadd.f32 %v1962_v63, %v2944_v60  ;;  %v1963_v47 = vmul.f32 %v2606_v46, %v2960_v14 }
 0x8da   :  { %v1965_v11 = vadd.f32 %v1961_v5, %v2947_v61  ;;  %v2006_v61 = vld [vmem:[#allocation2] ss:$0 sm:$0xff] }
 0x8db   :  { %v1969_v35 = vmul.f32 %v1966_v4, %v1964_v33  ;;  %v1967_v43 = vadd.f32 %v1963_v47, %v2963_v55 }
 0x8dc   :  { %v1968_v38 = vmul.f32 %v1965_v11, %v1789_v10 }
 0x8de   :  { %v1970_v42 = vadd.f32 %v1969_v35, %v1968_v38 }
 0x8e0   :  { %2607 = vtanh.f32 %v1970_v42 }
 0x8ea   :  { %v2608_v50 = vpop.eup %2607 }
 0x8eb   :  { %v1972_v49 = vmul.f32 %v2608_v50, %v1967_v43 }
 0x8ed   :  { %v1980_v56 = vmul.f32 %v2005_v48, %v1972_v49 }
 0x8ef   :  { %v1982_v60 = vsel %vm1981_vm1, %v1980_v56, 0.0 }
 0x8f0   :  { %1983 = vadd.xlane.f32.xlu0 %v1982_v60 }
 0x97d   :  { %v1984_v54 = vpop.xlane.xlu0 %1983 }
 0x97e   :  { %v1992_v58 = vadd.f32 %v2006_v61, %v1984_v54 }
 0x980   :  { %1994 = vst.msk [vmem:[%s3377_s9] sm:$0x3] %vm1993_vm2, %v1992_v58 }
 0x981   :  { %1999 = vsyncpa [#allocation4], 1 }
 0x982   :  { %2000 = vsyncpa [#allocation6], 1 }

</bundles_post_ra>
